<compile_context>
chip_gen: v6e
topology: v6e:2x2x1
jax: 0.10.0
libtpu: 0.0.40
codegen_flags: <defaults>
</compile_context>

<pallas_src>
import functools

import jax
import jax.numpy as jnp
from jax.experimental import pallas as pl
from jax.experimental.pallas import tpu as pltpu

# Matmul-operand dtype.  bf16 is MXU-native on v6e/v7x (f32 operands cost a
# multi-pass); accumulation stays f32 via preferred_element_type.  Set to
# jnp.float32 for a ~1e-4-tight match with a pure-f32 reference.
_MM_DTYPE = jnp.bfloat16


# ------------------------- fused BasicBlock kernel -------------------------- #

def _basic_block_kernel(*refs, H, W, Cin, Cout, stride, equal):
    x_ref, s1_ref, b1_ref, w1_ref, s2_ref, b2_ref, w2_ref = refs[:7]
    i = 7
    wsc_ref = None
    if not equal:
        wsc_ref = refs[i]; i += 1
    o_ref = refs[i]; i += 1
    pad1, pad2 = refs[i], refs[i + 1]; i += 2
    if stride > 1:
        pad1_e, pad1_o = refs[i], refs[i + 1]

    Ho = (H - 1) // stride + 1
    Wo = (W - 1) // stride + 1

    # ---- bn1 + relu (eval-mode BN folded into per-channel affine), f32 ----
    x = x_ref[0]                                             # (H, W, Cin) f32
    o = jnp.maximum(x * s1_ref[...].reshape(1, 1, Cin)
                    + b1_ref[...].reshape(1, 1, Cin), 0.0)

    # ---- zero ONLY the 1-px halo; the interior is fully overwritten below ----
    zr = jnp.zeros((1, W + 2, Cin), jnp.float32)
    zc = jnp.zeros((H + 2, 1, Cin), jnp.float32)
    pad1[pl.ds(0, 1), pl.ds(0, W + 2), :] = zr
    pad1[pl.ds(H + 1, 1), pl.ds(0, W + 2), :] = zr
    pad1[pl.ds(0, H + 2), pl.ds(0, 1), :] = zc
    pad1[pl.ds(0, H + 2), pl.ds(W + 1, 1), :] = zc
    pad1[pl.ds(1, H), pl.ds(1, W), :] = o                    # interior

    if stride == 1:
        def tap1(ky, kx):                                    # contiguous reads
            return pad1[pl.ds(ky, Ho), pl.ds(kx, Wo), :]
    else:
        # Hoist the stride-2 W deinterleave out of the tap loop: split the padded
        # activation into even/odd W phases ONCE (2 strided passes instead of 10
        # strided sublane gathers); taps then read contiguous sublanes.
        We = (W + 3) // 2
        Wod = (W + 2) // 2
        pad1_e[...] = pad1[pl.ds(0, H + 2), pl.ds(0, We, stride=2), :]
        pad1_o[...] = pad1[pl.ds(0, H + 2), pl.ds(1, Wod, stride=2), :]

        def tap1(ky, kx):
            src = pad1_e if kx % 2 == 0 else pad1_o
            return src[pl.ds(ky, Ho, stride=stride), pl.ds(kx // 2, Wo), :]

    # ---- conv1: 3x3 / stride, 9-tap MXU accumulation (no im2col scratch) ----
    h = None
    for t in range(9):
        ky, kx = divmod(t, 3)
        patch = tap1(ky, kx).reshape(Ho * Wo, Cin).astype(w1_ref.dtype)
        d = jnp.dot(patch, w1_ref[t], preferred_element_type=jnp.float32)
        h = d if h is None else h + d                        # (Ho*Wo, Cout) f32

    # ---- bn2 + relu (f32)  (dropRate == 0.0 -> dropout is the identity) ----
    h = jnp.maximum(h * s2_ref[...] + b2_ref[...], 0.0)

    # ---- conv2: 3x3 / stride 1, same tap accumulation ----
    zr2 = jnp.zeros((1, Wo + 2, Cout), jnp.float32)
    zc2 = jnp.zeros((Ho + 2, 1, Cout), jnp.float32)
    pad2[pl.ds(0, 1), pl.ds(0, Wo + 2), :] = zr2
    pad2[pl.ds(Ho + 1, 1), pl.ds(0, Wo + 2), :] = zr2
    pad2[pl.ds(0, Ho + 2), pl.ds(0, 1), :] = zc2
    pad2[pl.ds(0, Ho + 2), pl.ds(Wo + 1, 1), :] = zc2
    pad2[pl.ds(1, Ho), pl.ds(1, Wo), :] = h.reshape(Ho, Wo, Cout)

    h2 = None
    for t in range(9):
        ky, kx = divmod(t, 3)
        patch = pad2[pl.ds(ky, Ho), pl.ds(kx, Wo), :].reshape(Ho * Wo, Cout)
        d = jnp.dot(patch.astype(w2_ref.dtype), w2_ref[t],
                    preferred_element_type=jnp.float32)
        h2 = d if h2 is None else h2 + d

    # ---- shortcut ----
    if equal:
        skip = x.reshape(Ho * Wo, Cout)                      # identity (stride == 1)
    else:
        if stride == 1:
            o_sub = pad1[pl.ds(1, Ho), pl.ds(1, Wo), :]
        else:
            # o[2i, 2j] == pad1[1+2i, 1+2j] -> odd-W phase, contiguous columns
            o_sub = pad1_o[pl.ds(1, Ho, stride=stride), pl.ds(0, Wo), :]
        skip = jnp.dot(o_sub.reshape(Ho * Wo, Cin).astype(wsc_ref.dtype),
                       wsc_ref[...], preferred_element_type=jnp.float32)

    # ---- residual add, single store per block ----
    o_ref[...] = (skip + h2).reshape(1, Ho, Wo, Cout)


def basic_block_forward(x, p):
    """One fused BasicBlock as a single pallas_call.  x: (N, H, W, Cin) f32 NHWC."""
    N, H, W, Cin = x.shape
    Cout = p["w1"].shape[-1]
    stride = p["stride"]
    equal = p["equal"]
    assert stride == 1 or not equal, \
        "identity shortcut requires stride == 1 (WideResNet contract)"
    Ho = (H - 1) // stride + 1
    Wo = (W - 1) // stride + 1

    s1, b1 = p["bn1"]
    s2, b2 = p["bn2"]
    w1 = p["w1"].reshape(9, Cin, Cout).astype(_MM_DTYPE)     # (tap, Cin, Cout)
    w2 = p["w2"].reshape(9, Cout, Cout).astype(_MM_DTYPE)

    args = [x, s1.reshape(1, Cin), b1.reshape(1, Cin), w1,
            s2.reshape(1, Cout), b2.reshape(1, Cout), w2]
    # TODO(synk): these weight/affine specs have constant index_maps; with
    # pipeline_mode=pl.Buffered(1) they would stop reserving a useless second
    # pipeline buffer (matters at Cout>=640, especially on v7x's 64 MiB VMEM).
    in_specs = [
        pl.BlockSpec((1, H, W, Cin), lambda n: (n, 0, 0, 0)),
        pl.BlockSpec((1, Cin), lambda n: (0, 0)),
        pl.BlockSpec((1, Cin), lambda n: (0, 0)),
        pl.BlockSpec((9, Cin, Cout), lambda n: (0, 0, 0)),
        pl.BlockSpec((1, Cout), lambda n: (0, 0)),
        pl.BlockSpec((1, Cout), lambda n: (0, 0)),
        pl.BlockSpec((9, Cout, Cout), lambda n: (0, 0, 0)),
    ]
    if not equal:
        args.append(p["w_short"].astype(_MM_DTYPE))
        in_specs.append(pl.BlockSpec((Cin, Cout), lambda n: (0, 0)))

    scratch = [
        pltpu.VMEM((H + 2, W + 2, Cin), jnp.float32),        # padded relu(bn1(x))
        pltpu.VMEM((Ho + 2, Wo + 2, Cout), jnp.float32),     # padded relu(bn2(h))
    ]
    We = (W + 3) // 2
    Wod = (W + 2) // 2
    if stride > 1:
        scratch += [pltpu.VMEM((H + 2, We, Cin), jnp.float32),   # even-W phase
                    pltpu.VMEM((H + 2, Wod, Cin), jnp.float32)]  # odd-W phase

    # Explicit VMEM budget: double-buffered in/out blocks + scratch, 2x headroom.
    mm_b = jnp.dtype(_MM_DTYPE).itemsize
    blk = (H * W * Cin + Ho * Wo * Cout + 2 * (Cin + Cout)) * 4 \
        + (9 * Cin * Cout + 9 * Cout * Cout + (0 if equal else Cin * Cout)) * mm_b
    scr = ((H + 2) * (W + 2) * Cin + (Ho + 2) * (Wo + 2) * Cout) * 4
    if stride > 1:
        scr += (H + 2) * (We + Wod) * Cin * 4
    vmem_limit = int(min(64 << 20, max(32 << 20, 2 * (2 * blk + scr))))

    # TODO(synk): for STL/disco-sized inputs (H=W up to 96, C>=160) add an
    # output-row tile grid axis so per-step scratch stays within v7x's 64 MiB
    # VMEM, and fold a batch tile into the matmul M dim when Ho*Wo < 256.
    kern = functools.partial(_basic_block_kernel, H=H, W=W, Cin=Cin, Cout=Cout,
                             stride=stride, equal=equal)
    return pl.pallas_call(
        kern,
        out_shape=jax.ShapeDtypeStruct((N, Ho, Wo, Cout), jnp.float32),
        grid=(N,),
        in_specs=in_specs,
        out_specs=pl.BlockSpec((1, Ho, Wo, Cout), lambda n: (n, 0, 0, 0)),
        scratch_shapes=scratch,
        compiler_params=pltpu.CompilerParams(
            dimension_semantics=("parallel",),       # v7x: 2 TCs split the batch
            vmem_limit_bytes=vmem_limit),
    )(*args)


# --------------------------- module construction --------------------------- #

def _init_bn(key, c):
    k1, k2 = jax.random.split(key)
    gamma = jax.random.uniform(k1, (c,), jnp.float32, 0.5, 1.5)
    beta = jax.random.normal(k2, (c,), jnp.float32) * 0.1
    mean = jnp.zeros((c,), jnp.float32)
    var = jnp.ones((c,), jnp.float32)
    eps = 1e-5
    scale = gamma / jnp.sqrt(var + eps)
    shift = beta - mean * scale
    return scale, shift


def _init_conv(key, kh, kw, cin, cout):
    n = kh * kw * cout  # PyTorch kaiming fan_out init used by WideResNet
    return jax.random.normal(key, (kh, kw, cin, cout), jnp.float32) * jnp.sqrt(2.0 / n)


def init_basic_block(key, in_planes, out_planes, stride):
    assert stride == 1 or in_planes != out_planes or stride == 1
    k = jax.random.split(key, 5)
    p = {
        "equal": in_planes == out_planes,
        "stride": stride,
        "bn1": _init_bn(k[0], in_planes),
        "w1": _init_conv(k[1], 3, 3, in_planes, out_planes),
        "bn2": _init_bn(k[2], out_planes),
        "w2": _init_conv(k[3], 3, 3, out_planes, out_planes),
    }
    if not p["equal"]:
        p["w_short"] = _init_conv(k[4], 1, 1, in_planes, out_planes)[0, 0]  # (Cin,Cout)
    return p


def init_network_block(key, nb_layers, in_planes, out_planes, stride):
    keys = jax.random.split(key, nb_layers)
    blocks = []
    for i in range(nb_layers):
        cin = in_planes if i == 0 else out_planes
        s = stride if i == 0 else 1
        blocks.append(init_basic_block(keys[i], cin, out_planes, s))
    return blocks


def network_block_forward(x_nchw, blocks):
    """PyTorch-compatible entry point: x is NCHW, returns NCHW (eval mode)."""
    # TODO(synk): on v5e (lowest HBM BW) consecutive stride-1 `equal` blocks could
    # be fused into one pallas_call (activation kept in VMEM between blocks).
    x = jnp.transpose(x_nchw, (0, 2, 3, 1)).astype(jnp.float32)  # -> NHWC
    for p in blocks:
        x = basic_block_forward(x, p)
    return jnp.transpose(x, (0, 3, 1, 2))                        # -> NCHW


# ------------------------- pure-JAX reference check ------------------------- #

def _ref_conv(x, w, stride, padding):
    # Same operand quantization as the kernel (bf16 operands, f32 accumulate).
    return jax.lax.conv_general_dilated(
        x.astype(_MM_DTYPE), w.astype(_MM_DTYPE), (stride, stride), padding,
        dimension_numbers=("NHWC", "HWIO", "NHWC"),
        preferred_element_type=jnp.float32)


def _ref_block(x, p):
    stride = p["stride"]
    s1, b1 = p["bn1"]
    o = jnp.maximum(x * s1 + b1, 0.0)
    if p["equal"]:
        skip = x
    else:
        skip = _ref_conv(o, p["w_short"][None, None], stride, ((0, 0), (0, 0)))
    h = _ref_conv(o, p["w1"], stride, ((1, 1), (1, 1)))
    s2, b2 = p["bn2"]
    h = jnp.maximum(h * s2 + b2, 0.0)
    h = _ref_conv(h, p["w2"], 1, ((1, 1), (1, 1)))
    return skip + h


def _ref_forward(x_nchw, blocks):
    x = jnp.transpose(x_nchw, (0, 2, 3, 1)).astype(jnp.float32)
    for p in blocks:
        x = _ref_block(x, p)
    return jnp.transpose(x, (0, 3, 1, 2))


# ----------------------------------- main ----------------------------------- #

if __name__ == "__main__":
    key = jax.random.PRNGKey(0)
    kx, kp = jax.random.split(key)

    # NetworkBlock(nb_layers=2, in_planes=4, out_planes=8, block=BasicBlock, stride=2)
    # NOTE: this toy width (C=4/8, 16x16) exercises <10% of the lanes and is
    # launch/DMA-overhead-bound; the kernel is intended for widths C >= 128.
    N, Cin, H, W = 2, 4, 16, 16
    nb_layers, out_planes, stride = 2, 8, 2

    x = jax.random.normal(kx, (N, Cin, H, W), jnp.float32)       # NCHW like PyTorch
    blocks = init_network_block(kp, nb_layers, Cin, out_planes, stride)

    y = jax.block_until_ready(network_block_forward(x, blocks))
    y_ref = jax.block_until_ready(_ref_forward(x, blocks))

    assert y.shape == (N, out_planes, H // stride, W // stride), y.shape
    tol = 1e-4 if _MM_DTYPE == jnp.float32 else 2e-2             # bf16 MXU operands
    assert jnp.allclose(y, y_ref, rtol=tol, atol=tol), float(jnp.max(jnp.abs(y - y_ref)))

    print("KERNEL_OK")
</pallas_src>

<mosaic_0001>
module attributes {stable_mosaic.version = 11 : i64} {
  func.func @_basic_block_kernel(%arg0: i32, %arg1: memref<1x16x16x4xf32, #tpu.memory_space<vmem>>, %arg2: memref<1x4xf32, #tpu.memory_space<vmem>>, %arg3: memref<1x4xf32, #tpu.memory_space<vmem>>, %arg4: memref<9x4x8xbf16, #tpu.memory_space<vmem>>, %arg5: memref<1x8xf32, #tpu.memory_space<vmem>>, %arg6: memref<1x8xf32, #tpu.memory_space<vmem>>, %arg7: memref<9x8x8xbf16, #tpu.memory_space<vmem>>, %arg8: memref<4x8xbf16, #tpu.memory_space<vmem>>, %arg9: memref<1x8x8x8xf32, #tpu.memory_space<vmem>>, %arg10: memref<18x18x4xf32, #tpu.memory_space<vmem>>, %arg11: memref<10x10x8xf32, #tpu.memory_space<vmem>>, %arg12: memref<18x9x4xf32, #tpu.memory_space<vmem>>, %arg13: memref<18x9x4xf32, #tpu.memory_space<vmem>>) attributes {dimension_semantics = [#tpu.dimension_semantics<parallel>], iteration_bounds = array<i64: 2>, scalar_prefetch = 0 : i64, scratch_operands = 4 : i64, tpu.core_type = #tpu.core_type<tc>, window_params = [{transform_indices = @transform_0, window_bounds = array<i64: 1, 16, 16, 4>}, {pipeline_mode = #tpu.pipeline_mode<synchronous>, transform_indices = @transform_1, window_bounds = array<i64: 1, 4>}, {pipeline_mode = #tpu.pipeline_mode<synchronous>, transform_indices = @transform_2, window_bounds = array<i64: 1, 4>}, {pipeline_mode = #tpu.pipeline_mode<synchronous>, transform_indices = @transform_3, window_bounds = array<i64: 9, 4, 8>}, {pipeline_mode = #tpu.pipeline_mode<synchronous>, transform_indices = @transform_4, window_bounds = array<i64: 1, 8>}, {pipeline_mode = #tpu.pipeline_mode<synchronous>, transform_indices = @transform_5, window_bounds = array<i64: 1, 8>}, {pipeline_mode = #tpu.pipeline_mode<synchronous>, transform_indices = @transform_6, window_bounds = array<i64: 9, 8, 8>}, {pipeline_mode = #tpu.pipeline_mode<synchronous>, transform_indices = @transform_7, window_bounds = array<i64: 4, 8>}, {transform_indices = @transform_8, window_bounds = array<i64: 1, 8, 8, 8>}]} {
    %c0 = arith.constant 0 : index
    %c0_0 = arith.constant 0 : index
    %c0_1 = arith.constant 0 : index
    %c0_2 = arith.constant 0 : index
    %0 = vector.load %arg1[%c0, %c0_0, %c0_1, %c0_2] : memref<1x16x16x4xf32, #tpu.memory_space<vmem>>, vector<1x16x16x4xf32>
    %1 = vector.shape_cast %0 : vector<1x16x16x4xf32> to vector<16x16x4xf32>
    %c0_3 = arith.constant 0 : index
    %c0_4 = arith.constant 0 : index
    %2 = vector.load %arg2[%c0_3, %c0_4] : memref<1x4xf32, #tpu.memory_space<vmem>>, vector<1x4xf32>
    %3 = vector.shape_cast %2 : vector<1x4xf32> to vector<1x1x4xf32>
    %4 = vector.broadcast %3 : vector<1x1x4xf32> to vector<16x16x4xf32>
    %5 = arith.mulf %1, %4 : vector<16x16x4xf32>
    %c0_5 = arith.constant 0 : index
    %c0_6 = arith.constant 0 : index
    %6 = vector.load %arg3[%c0_5, %c0_6] : memref<1x4xf32, #tpu.memory_space<vmem>>, vector<1x4xf32>
    %7 = vector.shape_cast %6 : vector<1x4xf32> to vector<1x1x4xf32>
    %8 = vector.broadcast %7 : vector<1x1x4xf32> to vector<16x16x4xf32>
    %9 = arith.addf %5, %8 : vector<16x16x4xf32>
    %cst = arith.constant 0.000000e+00 : f32
    %10 = vector.broadcast %cst : f32 to vector<16x16x4xf32>
    %11 = arith.maximumf %9, %10 : vector<16x16x4xf32>
    %cst_7 = arith.constant 0.000000e+00 : f32
    %12 = vector.broadcast %cst_7 : f32 to vector<1x18x4xf32>
    %cst_8 = arith.constant 0.000000e+00 : f32
    %13 = vector.broadcast %cst_8 : f32 to vector<18x1x4xf32>
    %c0_9 = arith.constant 0 : index
    %c0_10 = arith.constant 0 : index
    %c0_11 = arith.constant 0 : index
    %14 = vector.load %arg10[%c0_9, %c0_10, %c0_11] : memref<18x18x4xf32, #tpu.memory_space<vmem>>, vector<1x18x4xf32>
    tpu.vector_store %arg10[%c0_9, %c0_10, %c0_11], %12 {strides = array<i32>} : memref<18x18x4xf32, #tpu.memory_space<vmem>>, vector<1x18x4xf32>,
    %c17 = arith.constant 17 : index
    %c0_12 = arith.constant 0 : index
    %c0_13 = arith.constant 0 : index
    %15 = vector.load %arg10[%c17, %c0_12, %c0_13] : memref<18x18x4xf32, #tpu.memory_space<vmem>>, vector<1x18x4xf32>
    tpu.vector_store %arg10[%c17, %c0_12, %c0_13], %12 {strides = array<i32>} : memref<18x18x4xf32, #tpu.memory_space<vmem>>, vector<1x18x4xf32>,
    %c0_14 = arith.constant 0 : index
    %c0_15 = arith.constant 0 : index
    %c0_16 = arith.constant 0 : index
    %16 = vector.load %arg10[%c0_14, %c0_15, %c0_16] : memref<18x18x4xf32, #tpu.memory_space<vmem>>, vector<18x1x4xf32>
    tpu.vector_store %arg10[%c0_14, %c0_15, %c0_16], %13 {strides = array<i32>} : memref<18x18x4xf32, #tpu.memory_space<vmem>>, vector<18x1x4xf32>,
    %c0_17 = arith.constant 0 : index
    %c17_18 = arith.constant 17 : index
    %c0_19 = arith.constant 0 : index
    %17 = vector.load %arg10[%c0_17, %c17_18, %c0_19] : memref<18x18x4xf32, #tpu.memory_space<vmem>>, vector<18x1x4xf32>
    tpu.vector_store %arg10[%c0_17, %c17_18, %c0_19], %13 {strides = array<i32>} : memref<18x18x4xf32, #tpu.memory_space<vmem>>, vector<18x1x4xf32>,
    %c1 = arith.constant 1 : index
    %c1_20 = arith.constant 1 : index
    %c0_21 = arith.constant 0 : index
    %18 = vector.load %arg10[%c1, %c1_20, %c0_21] : memref<18x18x4xf32, #tpu.memory_space<vmem>>, vector<16x16x4xf32>
    tpu.vector_store %arg10[%c1, %c1_20, %c0_21], %11 {strides = array<i32>} : memref<18x18x4xf32, #tpu.memory_space<vmem>>, vector<16x16x4xf32>,
    %c0_22 = arith.constant 0 : index
    %c0_23 = arith.constant 0 : index
    %c0_24 = arith.constant 0 : index
    %19 = tpu.strided_load %arg10[%c0_22, %c0_23, %c0_24] {strides = array<i32: 1, 2, 1>} : memref<18x18x4xf32, #tpu.memory_space<vmem>>, vector<18x9x4xf32>
    %c0_25 = arith.constant 0 : index
    %c0_26 = arith.constant 0 : index
    %c0_27 = arith.constant 0 : index
    %20 = vector.load %arg12[%c0_25, %c0_26, %c0_27] : memref<18x9x4xf32, #tpu.memory_space<vmem>>, vector<18x9x4xf32>
    tpu.vector_store %arg12[%c0_25, %c0_26, %c0_27], %19 {strides = array<i32>} : memref<18x9x4xf32, #tpu.memory_space<vmem>>, vector<18x9x4xf32>,
    %c0_28 = arith.constant 0 : index
    %c1_29 = arith.constant 1 : index
    %c0_30 = arith.constant 0 : index
    %21 = tpu.strided_load %arg10[%c0_28, %c1_29, %c0_30] {strides = array<i32: 1, 2, 1>} : memref<18x18x4xf32, #tpu.memory_space<vmem>>, vector<18x9x4xf32>
    %c0_31 = arith.constant 0 : index
    %c0_32 = arith.constant 0 : index
    %c0_33 = arith.constant 0 : index
    %22 = vector.load %arg13[%c0_31, %c0_32, %c0_33] : memref<18x9x4xf32, #tpu.memory_space<vmem>>, vector<18x9x4xf32>
    tpu.vector_store %arg13[%c0_31, %c0_32, %c0_33], %21 {strides = array<i32>} : memref<18x9x4xf32, #tpu.memory_space<vmem>>, vector<18x9x4xf32>,
    %c0_34 = arith.constant 0 : index
    %c0_35 = arith.constant 0 : index
    %c0_36 = arith.constant 0 : index
    %23 = tpu.strided_load %arg12[%c0_34, %c0_35, %c0_36] {strides = array<i32: 2, 1, 1>} : memref<18x9x4xf32, #tpu.memory_space<vmem>>, vector<8x8x4xf32>
    %24 = vector.shape_cast %23 : vector<8x8x4xf32> to vector<64x4xf32>
    %25 = arith.truncf %24 : vector<64x4xf32> to vector<64x4xbf16>
    %c0_37 = arith.constant 0 : index
    %c0_38 = arith.constant 0 : index
    %c0_39 = arith.constant 0 : index
    %26 = vector.load %arg4[%c0_37, %c0_38, %c0_39] : memref<9x4x8xbf16, #tpu.memory_space<vmem>>, vector<1x4x8xbf16>
    %27 = vector.shape_cast %26 : vector<1x4x8xbf16> to vector<4x8xbf16>
    %cst_40 = arith.constant dense<0.000000e+00> : vector<64x8xf32>
    %28 = tpu.matmul %25, %27, %cst_40 {dimension_numbers = #tpu.dot_dimension_numbers<[1], [0], [0], [1], [0, 0, 1, 1], [], []>} : vector<64x4xbf16>, vector<4x8xbf16>, vector<64x8xf32> -> vector<64x8xf32>
    %c0_41 = arith.constant 0 : index
    %c0_42 = arith.constant 0 : index
    %c0_43 = arith.constant 0 : index
    %29 = tpu.strided_load %arg13[%c0_41, %c0_42, %c0_43] {strides = array<i32: 2, 1, 1>} : memref<18x9x4xf32, #tpu.memory_space<vmem>>, vector<8x8x4xf32>
    %30 = vector.shape_cast %29 : vector<8x8x4xf32> to vector<64x4xf32>
    %31 = arith.truncf %30 : vector<64x4xf32> to vector<64x4xbf16>
    %c1_44 = arith.constant 1 : index
    %c0_45 = arith.constant 0 : index
    %c0_46 = arith.constant 0 : index
    %32 = vector.load %arg4[%c1_44, %c0_45, %c0_46] : memref<9x4x8xbf16, #tpu.memory_space<vmem>>, vector<1x4x8xbf16>
    %33 = vector.shape_cast %32 : vector<1x4x8xbf16> to vector<4x8xbf16>
    %cst_47 = arith.constant dense<0.000000e+00> : vector<64x8xf32>
    %34 = tpu.matmul %31, %33, %cst_47 {dimension_numbers = #tpu.dot_dimension_numbers<[1], [0], [0], [1], [0, 0, 1, 1], [], []>} : vector<64x4xbf16>, vector<4x8xbf16>, vector<64x8xf32> -> vector<64x8xf32>
    %35 = arith.addf %28, %34 : vector<64x8xf32>
    %c0_48 = arith.constant 0 : index
    %c1_49 = arith.constant 1 : index
    %c0_50 = arith.constant 0 : index
    %36 = tpu.strided_load %arg12[%c0_48, %c1_49, %c0_50] {strides = array<i32: 2, 1, 1>} : memref<18x9x4xf32, #tpu.memory_space<vmem>>, vector<8x8x4xf32>
    %37 = vector.shape_cast %36 : vector<8x8x4xf32> to vector<64x4xf32>
    %38 = arith.truncf %37 : vector<64x4xf32> to vector<64x4xbf16>
    %c2 = arith.constant 2 : index
    %c0_51 = arith.constant 0 : index
    %c0_52 = arith.constant 0 : index
    %39 = vector.load %arg4[%c2, %c0_51, %c0_52] : memref<9x4x8xbf16, #tpu.memory_space<vmem>>, vector<1x4x8xbf16>
    %40 = vector.shape_cast %39 : vector<1x4x8xbf16> to vector<4x8xbf16>
    %cst_53 = arith.constant dense<0.000000e+00> : vector<64x8xf32>
    %41 = tpu.matmul %38, %40, %cst_53 {dimension_numbers = #tpu.dot_dimension_numbers<[1], [0], [0], [1], [0, 0, 1, 1], [], []>} : vector<64x4xbf16>, vector<4x8xbf16>, vector<64x8xf32> -> vector<64x8xf32>
    %42 = arith.addf %35, %41 : vector<64x8xf32>
    %c1_54 = arith.constant 1 : index
    %c0_55 = arith.constant 0 : index
    %c0_56 = arith.constant 0 : index
    %43 = tpu.strided_load %arg12[%c1_54, %c0_55, %c0_56] {strides = array<i32: 2, 1, 1>} : memref<18x9x4xf32, #tpu.memory_space<vmem>>, vector<8x8x4xf32>
    %44 = vector.shape_cast %43 : vector<8x8x4xf32> to vector<64x4xf32>
    %45 = arith.truncf %44 : vector<64x4xf32> to vector<64x4xbf16>
    %c3 = arith.constant 3 : index
    %c0_57 = arith.constant 0 : index
    %c0_58 = arith.constant 0 : index
    %46 = vector.load %arg4[%c3, %c0_57, %c0_58] : memref<9x4x8xbf16, #tpu.memory_space<vmem>>, vector<1x4x8xbf16>
    %47 = vector.shape_cast %46 : vector<1x4x8xbf16> to vector<4x8xbf16>
    %cst_59 = arith.constant dense<0.000000e+00> : vector<64x8xf32>
    %48 = tpu.matmul %45, %47, %cst_59 {dimension_numbers = #tpu.dot_dimension_numbers<[1], [0], [0], [1], [0, 0, 1, 1], [], []>} : vector<64x4xbf16>, vector<4x8xbf16>, vector<64x8xf32> -> vector<64x8xf32>
    %49 = arith.addf %42, %48 : vector<64x8xf32>
    %c1_60 = arith.constant 1 : index
    %c0_61 = arith.constant 0 : index
    %c0_62 = arith.constant 0 : index
    %50 = tpu.strided_load %arg13[%c1_60, %c0_61, %c0_62] {strides = array<i32: 2, 1, 1>} : memref<18x9x4xf32, #tpu.memory_space<vmem>>, vector<8x8x4xf32>
    %51 = vector.shape_cast %50 : vector<8x8x4xf32> to vector<64x4xf32>
    %52 = arith.truncf %51 : vector<64x4xf32> to vector<64x4xbf16>
    %c4 = arith.constant 4 : index
    %c0_63 = arith.constant 0 : index
    %c0_64 = arith.constant 0 : index
    %53 = vector.load %arg4[%c4, %c0_63, %c0_64] : memref<9x4x8xbf16, #tpu.memory_space<vmem>>, vector<1x4x8xbf16>
    %54 = vector.shape_cast %53 : vector<1x4x8xbf16> to vector<4x8xbf16>
    %cst_65 = arith.constant dense<0.000000e+00> : vector<64x8xf32>
    %55 = tpu.matmul %52, %54, %cst_65 {dimension_numbers = #tpu.dot_dimension_numbers<[1], [0], [0], [1], [0, 0, 1, 1], [], []>} : vector<64x4xbf16>, vector<4x8xbf16>, vector<64x8xf32> -> vector<64x8xf32>
    %56 = arith.addf %49, %55 : vector<64x8xf32>
    %c1_66 = arith.constant 1 : index
    %c1_67 = arith.constant 1 : index
    %c0_68 = arith.constant 0 : index
    %57 = tpu.strided_load %arg12[%c1_66, %c1_67, %c0_68] {strides = array<i32: 2, 1, 1>} : memref<18x9x4xf32, #tpu.memory_space<vmem>>, vector<8x8x4xf32>
    %58 = vector.shape_cast %57 : vector<8x8x4xf32> to vector<64x4xf32>
    %59 = arith.truncf %58 : vector<64x4xf32> to vector<64x4xbf16>
    %c5 = arith.constant 5 : index
    %c0_69 = arith.constant 0 : index
    %c0_70 = arith.constant 0 : index
    %60 = vector.load %arg4[%c5, %c0_69, %c0_70] : memref<9x4x8xbf16, #tpu.memory_space<vmem>>, vector<1x4x8xbf16>
    %61 = vector.shape_cast %60 : vector<1x4x8xbf16> to vector<4x8xbf16>
    %cst_71 = arith.constant dense<0.000000e+00> : vector<64x8xf32>
    %62 = tpu.matmul %59, %61, %cst_71 {dimension_numbers = #tpu.dot_dimension_numbers<[1], [0], [0], [1], [0, 0, 1, 1], [], []>} : vector<64x4xbf16>, vector<4x8xbf16>, vector<64x8xf32> -> vector<64x8xf32>
    %63 = arith.addf %56, %62 : vector<64x8xf32>
    %c2_72 = arith.constant 2 : index
    %c0_73 = arith.constant 0 : index
    %c0_74 = arith.constant 0 : index
    %64 = tpu.strided_load %arg12[%c2_72, %c0_73, %c0_74] {strides = array<i32: 2, 1, 1>} : memref<18x9x4xf32, #tpu.memory_space<vmem>>, vector<8x8x4xf32>
    %65 = vector.shape_cast %64 : vector<8x8x4xf32> to vector<64x4xf32>
    %66 = arith.truncf %65 : vector<64x4xf32> to vector<64x4xbf16>
    %c6 = arith.constant 6 : index
    %c0_75 = arith.constant 0 : index
    %c0_76 = arith.constant 0 : index
    %67 = vector.load %arg4[%c6, %c0_75, %c0_76] : memref<9x4x8xbf16, #tpu.memory_space<vmem>>, vector<1x4x8xbf16>
    %68 = vector.shape_cast %67 : vector<1x4x8xbf16> to vector<4x8xbf16>
    %cst_77 = arith.constant dense<0.000000e+00> : vector<64x8xf32>
    %69 = tpu.matmul %66, %68, %cst_77 {dimension_numbers = #tpu.dot_dimension_numbers<[1], [0], [0], [1], [0, 0, 1, 1], [], []>} : vector<64x4xbf16>, vector<4x8xbf16>, vector<64x8xf32> -> vector<64x8xf32>
    %70 = arith.addf %63, %69 : vector<64x8xf32>
    %c2_78 = arith.constant 2 : index
    %c0_79 = arith.constant 0 : index
    %c0_80 = arith.constant 0 : index
    %71 = tpu.strided_load %arg13[%c2_78, %c0_79, %c0_80] {strides = array<i32: 2, 1, 1>} : memref<18x9x4xf32, #tpu.memory_space<vmem>>, vector<8x8x4xf32>
    %72 = vector.shape_cast %71 : vector<8x8x4xf32> to vector<64x4xf32>
    %73 = arith.truncf %72 : vector<64x4xf32> to vector<64x4xbf16>
    %c7 = arith.constant 7 : index
    %c0_81 = arith.constant 0 : index
    %c0_82 = arith.constant 0 : index
    %74 = vector.load %arg4[%c7, %c0_81, %c0_82] : memref<9x4x8xbf16, #tpu.memory_space<vmem>>, vector<1x4x8xbf16>
    %75 = vector.shape_cast %74 : vector<1x4x8xbf16> to vector<4x8xbf16>
    %cst_83 = arith.constant dense<0.000000e+00> : vector<64x8xf32>
    %76 = tpu.matmul %73, %75, %cst_83 {dimension_numbers = #tpu.dot_dimension_numbers<[1], [0], [0], [1], [0, 0, 1, 1], [], []>} : vector<64x4xbf16>, vector<4x8xbf16>, vector<64x8xf32> -> vector<64x8xf32>
    %77 = arith.addf %70, %76 : vector<64x8xf32>
    %c2_84 = arith.constant 2 : index
    %c1_85 = arith.constant 1 : index
    %c0_86 = arith.constant 0 : index
    %78 = tpu.strided_load %arg12[%c2_84, %c1_85, %c0_86] {strides = array<i32: 2, 1, 1>} : memref<18x9x4xf32, #tpu.memory_space<vmem>>, vector<8x8x4xf32>
    %79 = vector.shape_cast %78 : vector<8x8x4xf32> to vector<64x4xf32>
    %80 = arith.truncf %79 : vector<64x4xf32> to vector<64x4xbf16>
    %c8 = arith.constant 8 : index
    %c0_87 = arith.constant 0 : index
    %c0_88 = arith.constant 0 : index
    %81 = vector.load %arg4[%c8, %c0_87, %c0_88] : memref<9x4x8xbf16, #tpu.memory_space<vmem>>, vector<1x4x8xbf16>
    %82 = vector.shape_cast %81 : vector<1x4x8xbf16> to vector<4x8xbf16>
    %cst_89 = arith.constant dense<0.000000e+00> : vector<64x8xf32>
    %83 = tpu.matmul %80, %82, %cst_89 {dimension_numbers = #tpu.dot_dimension_numbers<[1], [0], [0], [1], [0, 0, 1, 1], [], []>} : vector<64x4xbf16>, vector<4x8xbf16>, vector<64x8xf32> -> vector<64x8xf32>
    %84 = arith.addf %77, %83 : vector<64x8xf32>
    %c0_90 = arith.constant 0 : index
    %c0_91 = arith.constant 0 : index
    %85 = vector.load %arg5[%c0_90, %c0_91] : memref<1x8xf32, #tpu.memory_space<vmem>>, vector<1x8xf32>
    %86 = vector.broadcast %85 : vector<1x8xf32> to vector<64x8xf32>
    %87 = arith.mulf %84, %86 : vector<64x8xf32>
    %c0_92 = arith.constant 0 : index
    %c0_93 = arith.constant 0 : index
    %88 = vector.load %arg6[%c0_92, %c0_93] : memref<1x8xf32, #tpu.memory_space<vmem>>, vector<1x8xf32>
    %89 = vector.broadcast %88 : vector<1x8xf32> to vector<64x8xf32>
    %90 = arith.addf %87, %89 : vector<64x8xf32>
    %cst_94 = arith.constant 0.000000e+00 : f32
    %91 = vector.broadcast %cst_94 : f32 to vector<64x8xf32>
    %92 = arith.maximumf %90, %91 : vector<64x8xf32>
    %cst_95 = arith.constant 0.000000e+00 : f32
    %93 = vector.broadcast %cst_95 : f32 to vector<1x10x8xf32>
    %cst_96 = arith.constant 0.000000e+00 : f32
    %94 = vector.broadcast %cst_96 : f32 to vector<10x1x8xf32>
    %c0_97 = arith.constant 0 : index
    %c0_98 = arith.constant 0 : index
    %c0_99 = arith.constant 0 : index
    %95 = vector.load %arg11[%c0_97, %c0_98, %c0_99] : memref<10x10x8xf32, #tpu.memory_space<vmem>>, vector<1x10x8xf32>
    tpu.vector_store %arg11[%c0_97, %c0_98, %c0_99], %93 {strides = array<i32>} : memref<10x10x8xf32, #tpu.memory_space<vmem>>, vector<1x10x8xf32>,
    %c9 = arith.constant 9 : index
    %c0_100 = arith.constant 0 : index
    %c0_101 = arith.constant 0 : index
    %96 = vector.load %arg11[%c9, %c0_100, %c0_101] : memref<10x10x8xf32, #tpu.memory_space<vmem>>, vector<1x10x8xf32>
    tpu.vector_store %arg11[%c9, %c0_100, %c0_101], %93 {strides = array<i32>} : memref<10x10x8xf32, #tpu.memory_space<vmem>>, vector<1x10x8xf32>,
    %c0_102 = arith.constant 0 : index
    %c0_103 = arith.constant 0 : index
    %c0_104 = arith.constant 0 : index
    %97 = vector.load %arg11[%c0_102, %c0_103, %c0_104] : memref<10x10x8xf32, #tpu.memory_space<vmem>>, vector<10x1x8xf32>
    tpu.vector_store %arg11[%c0_102, %c0_103, %c0_104], %94 {strides = array<i32>} : memref<10x10x8xf32, #tpu.memory_space<vmem>>, vector<10x1x8xf32>,
    %c0_105 = arith.constant 0 : index
    %c9_106 = arith.constant 9 : index
    %c0_107 = arith.constant 0 : index
    %98 = vector.load %arg11[%c0_105, %c9_106, %c0_107] : memref<10x10x8xf32, #tpu.memory_space<vmem>>, vector<10x1x8xf32>
    tpu.vector_store %arg11[%c0_105, %c9_106, %c0_107], %94 {strides = array<i32>} : memref<10x10x8xf32, #tpu.memory_space<vmem>>, vector<10x1x8xf32>,
    %99 = vector.shape_cast %92 : vector<64x8xf32> to vector<8x8x8xf32>
    %c1_108 = arith.constant 1 : index
    %c1_109 = arith.constant 1 : index
    %c0_110 = arith.constant 0 : index
    %100 = vector.load %arg11[%c1_108, %c1_109, %c0_110] : memref<10x10x8xf32, #tpu.memory_space<vmem>>, vector<8x8x8xf32>
    tpu.vector_store %arg11[%c1_108, %c1_109, %c0_110], %99 {strides = array<i32>} : memref<10x10x8xf32, #tpu.memory_space<vmem>>, vector<8x8x8xf32>,
    %c0_111 = arith.constant 0 : index
    %c0_112 = arith.constant 0 : index
    %c0_113 = arith.constant 0 : index
    %101 = vector.load %arg11[%c0_111, %c0_112, %c0_113] : memref<10x10x8xf32, #tpu.memory_space<vmem>>, vector<8x8x8xf32>
    %102 = vector.shape_cast %101 : vector<8x8x8xf32> to vector<64x8xf32>
    %103 = arith.truncf %102 : vector<64x8xf32> to vector<64x8xbf16>
    %c0_114 = arith.constant 0 : index
    %c0_115 = arith.constant 0 : index
    %c0_116 = arith.constant 0 : index
    %104 = vector.load %arg7[%c0_114, %c0_115, %c0_116] : memref<9x8x8xbf16, #tpu.memory_space<vmem>>, vector<1x8x8xbf16>
    %105 = vector.shape_cast %104 : vector<1x8x8xbf16> to vector<8x8xbf16>
    %cst_117 = arith.constant dense<0.000000e+00> : vector<64x8xf32>
    %106 = tpu.matmul %103, %105, %cst_117 {dimension_numbers = #tpu.dot_dimension_numbers<[1], [0], [0], [1], [0, 0, 1, 1], [], []>} : vector<64x8xbf16>, vector<8x8xbf16>, vector<64x8xf32> -> vector<64x8xf32>
    %c0_118 = arith.constant 0 : index
    %c1_119 = arith.constant 1 : index
    %c0_120 = arith.constant 0 : index
    %107 = vector.load %arg11[%c0_118, %c1_119, %c0_120] : memref<10x10x8xf32, #tpu.memory_space<vmem>>, vector<8x8x8xf32>
    %108 = vector.shape_cast %107 : vector<8x8x8xf32> to vector<64x8xf32>
    %109 = arith.truncf %108 : vector<64x8xf32> to vector<64x8xbf16>
    %c1_121 = arith.constant 1 : index
    %c0_122 = arith.constant 0 : index
    %c0_123 = arith.constant 0 : index
    %110 = vector.load %arg7[%c1_121, %c0_122, %c0_123] : memref<9x8x8xbf16, #tpu.memory_space<vmem>>, vector<1x8x8xbf16>
    %111 = vector.shape_cast %110 : vector<1x8x8xbf16> to vector<8x8xbf16>
    %cst_124 = arith.constant dense<0.000000e+00> : vector<64x8xf32>
    %112 = tpu.matmul %109, %111, %cst_124 {dimension_numbers = #tpu.dot_dimension_numbers<[1], [0], [0], [1], [0, 0, 1, 1], [], []>} : vector<64x8xbf16>, vector<8x8xbf16>, vector<64x8xf32> -> vector<64x8xf32>
    %113 = arith.addf %106, %112 : vector<64x8xf32>
    %c0_125 = arith.constant 0 : index
    %c2_126 = arith.constant 2 : index
    %c0_127 = arith.constant 0 : index
    %114 = vector.load %arg11[%c0_125, %c2_126, %c0_127] : memref<10x10x8xf32, #tpu.memory_space<vmem>>, vector<8x8x8xf32>
    %115 = vector.shape_cast %114 : vector<8x8x8xf32> to vector<64x8xf32>
    %116 = arith.truncf %115 : vector<64x8xf32> to vector<64x8xbf16>
    %c2_128 = arith.constant 2 : index
    %c0_129 = arith.constant 0 : index
    %c0_130 = arith.constant 0 : index
    %117 = vector.load %arg7[%c2_128, %c0_129, %c0_130] : memref<9x8x8xbf16, #tpu.memory_space<vmem>>, vector<1x8x8xbf16>
    %118 = vector.shape_cast %117 : vector<1x8x8xbf16> to vector<8x8xbf16>
    %cst_131 = arith.constant dense<0.000000e+00> : vector<64x8xf32>
    %119 = tpu.matmul %116, %118, %cst_131 {dimension_numbers = #tpu.dot_dimension_numbers<[1], [0], [0], [1], [0, 0, 1, 1], [], []>} : vector<64x8xbf16>, vector<8x8xbf16>, vector<64x8xf32> -> vector<64x8xf32>
    %120 = arith.addf %113, %119 : vector<64x8xf32>
    %c1_132 = arith.constant 1 : index
    %c0_133 = arith.constant 0 : index
    %c0_134 = arith.constant 0 : index
    %121 = vector.load %arg11[%c1_132, %c0_133, %c0_134] : memref<10x10x8xf32, #tpu.memory_space<vmem>>, vector<8x8x8xf32>
    %122 = vector.shape_cast %121 : vector<8x8x8xf32> to vector<64x8xf32>
    %123 = arith.truncf %122 : vector<64x8xf32> to vector<64x8xbf16>
    %c3_135 = arith.constant 3 : index
    %c0_136 = arith.constant 0 : index
    %c0_137 = arith.constant 0 : index
    %124 = vector.load %arg7[%c3_135, %c0_136, %c0_137] : memref<9x8x8xbf16, #tpu.memory_space<vmem>>, vector<1x8x8xbf16>
    %125 = vector.shape_cast %124 : vector<1x8x8xbf16> to vector<8x8xbf16>
    %cst_138 = arith.constant dense<0.000000e+00> : vector<64x8xf32>
    %126 = tpu.matmul %123, %125, %cst_138 {dimension_numbers = #tpu.dot_dimension_numbers<[1], [0], [0], [1], [0, 0, 1, 1], [], []>} : vector<64x8xbf16>, vector<8x8xbf16>, vector<64x8xf32> -> vector<64x8xf32>
    %127 = arith.addf %120, %126 : vector<64x8xf32>
    %c1_139 = arith.constant 1 : index
    %c1_140 = arith.constant 1 : index
    %c0_141 = arith.constant 0 : index
    %128 = vector.load %arg11[%c1_139, %c1_140, %c0_141] : memref<10x10x8xf32, #tpu.memory_space<vmem>>, vector<8x8x8xf32>
    %129 = vector.shape_cast %128 : vector<8x8x8xf32> to vector<64x8xf32>
    %130 = arith.truncf %129 : vector<64x8xf32> to vector<64x8xbf16>
    %c4_142 = arith.constant 4 : index
    %c0_143 = arith.constant 0 : index
    %c0_144 = arith.constant 0 : index
    %131 = vector.load %arg7[%c4_142, %c0_143, %c0_144] : memref<9x8x8xbf16, #tpu.memory_space<vmem>>, vector<1x8x8xbf16>
    %132 = vector.shape_cast %131 : vector<1x8x8xbf16> to vector<8x8xbf16>
    %cst_145 = arith.constant dense<0.000000e+00> : vector<64x8xf32>
    %133 = tpu.matmul %130, %132, %cst_145 {dimension_numbers = #tpu.dot_dimension_numbers<[1], [0], [0], [1], [0, 0, 1, 1], [], []>} : vector<64x8xbf16>, vector<8x8xbf16>, vector<64x8xf32> -> vector<64x8xf32>
    %134 = arith.addf %127, %133 : vector<64x8xf32>
    %c1_146 = arith.constant 1 : index
    %c2_147 = arith.constant 2 : index
    %c0_148 = arith.constant 0 : index
    %135 = vector.load %arg11[%c1_146, %c2_147, %c0_148] : memref<10x10x8xf32, #tpu.memory_space<vmem>>, vector<8x8x8xf32>
    %136 = vector.shape_cast %135 : vector<8x8x8xf32> to vector<64x8xf32>
    %137 = arith.truncf %136 : vector<64x8xf32> to vector<64x8xbf16>
    %c5_149 = arith.constant 5 : index
    %c0_150 = arith.constant 0 : index
    %c0_151 = arith.constant 0 : index
    %138 = vector.load %arg7[%c5_149, %c0_150, %c0_151] : memref<9x8x8xbf16, #tpu.memory_space<vmem>>, vector<1x8x8xbf16>
    %139 = vector.shape_cast %138 : vector<1x8x8xbf16> to vector<8x8xbf16>
    %cst_152 = arith.constant dense<0.000000e+00> : vector<64x8xf32>
    %140 = tpu.matmul %137, %139, %cst_152 {dimension_numbers = #tpu.dot_dimension_numbers<[1], [0], [0], [1], [0, 0, 1, 1], [], []>} : vector<64x8xbf16>, vector<8x8xbf16>, vector<64x8xf32> -> vector<64x8xf32>
    %141 = arith.addf %134, %140 : vector<64x8xf32>
    %c2_153 = arith.constant 2 : index
    %c0_154 = arith.constant 0 : index
    %c0_155 = arith.constant 0 : index
    %142 = vector.load %arg11[%c2_153, %c0_154, %c0_155] : memref<10x10x8xf32, #tpu.memory_space<vmem>>, vector<8x8x8xf32>
    %143 = vector.shape_cast %142 : vector<8x8x8xf32> to vector<64x8xf32>
    %144 = arith.truncf %143 : vector<64x8xf32> to vector<64x8xbf16>
    %c6_156 = arith.constant 6 : index
    %c0_157 = arith.constant 0 : index
    %c0_158 = arith.constant 0 : index
    %145 = vector.load %arg7[%c6_156, %c0_157, %c0_158] : memref<9x8x8xbf16, #tpu.memory_space<vmem>>, vector<1x8x8xbf16>
    %146 = vector.shape_cast %145 : vector<1x8x8xbf16> to vector<8x8xbf16>
    %cst_159 = arith.constant dense<0.000000e+00> : vector<64x8xf32>
    %147 = tpu.matmul %144, %146, %cst_159 {dimension_numbers = #tpu.dot_dimension_numbers<[1], [0], [0], [1], [0, 0, 1, 1], [], []>} : vector<64x8xbf16>, vector<8x8xbf16>, vector<64x8xf32> -> vector<64x8xf32>
    %148 = arith.addf %141, %147 : vector<64x8xf32>
    %c2_160 = arith.constant 2 : index
    %c1_161 = arith.constant 1 : index
    %c0_162 = arith.constant 0 : index
    %149 = vector.load %arg11[%c2_160, %c1_161, %c0_162] : memref<10x10x8xf32, #tpu.memory_space<vmem>>, vector<8x8x8xf32>
    %150 = vector.shape_cast %149 : vector<8x8x8xf32> to vector<64x8xf32>
    %151 = arith.truncf %150 : vector<64x8xf32> to vector<64x8xbf16>
    %c7_163 = arith.constant 7 : index
    %c0_164 = arith.constant 0 : index
    %c0_165 = arith.constant 0 : index
    %152 = vector.load %arg7[%c7_163, %c0_164, %c0_165] : memref<9x8x8xbf16, #tpu.memory_space<vmem>>, vector<1x8x8xbf16>
    %153 = vector.shape_cast %152 : vector<1x8x8xbf16> to vector<8x8xbf16>
    %cst_166 = arith.constant dense<0.000000e+00> : vector<64x8xf32>
    %154 = tpu.matmul %151, %153, %cst_166 {dimension_numbers = #tpu.dot_dimension_numbers<[1], [0], [0], [1], [0, 0, 1, 1], [], []>} : vector<64x8xbf16>, vector<8x8xbf16>, vector<64x8xf32> -> vector<64x8xf32>
    %155 = arith.addf %148, %154 : vector<64x8xf32>
    %c2_167 = arith.constant 2 : index
    %c2_168 = arith.constant 2 : index
    %c0_169 = arith.constant 0 : index
    %156 = vector.load %arg11[%c2_167, %c2_168, %c0_169] : memref<10x10x8xf32, #tpu.memory_space<vmem>>, vector<8x8x8xf32>
    %157 = vector.shape_cast %156 : vector<8x8x8xf32> to vector<64x8xf32>
    %158 = arith.truncf %157 : vector<64x8xf32> to vector<64x8xbf16>
    %c8_170 = arith.constant 8 : index
    %c0_171 = arith.constant 0 : index
    %c0_172 = arith.constant 0 : index
    %159 = vector.load %arg7[%c8_170, %c0_171, %c0_172] : memref<9x8x8xbf16, #tpu.memory_space<vmem>>, vector<1x8x8xbf16>
    %160 = vector.shape_cast %159 : vector<1x8x8xbf16> to vector<8x8xbf16>
    %cst_173 = arith.constant dense<0.000000e+00> : vector<64x8xf32>
    %161 = tpu.matmul %158, %160, %cst_173 {dimension_numbers = #tpu.dot_dimension_numbers<[1], [0], [0], [1], [0, 0, 1, 1], [], []>} : vector<64x8xbf16>, vector<8x8xbf16>, vector<64x8xf32> -> vector<64x8xf32>
    %162 = arith.addf %155, %161 : vector<64x8xf32>
    %c1_174 = arith.constant 1 : index
    %c0_175 = arith.constant 0 : index
    %c0_176 = arith.constant 0 : index
    %163 = tpu.strided_load %arg13[%c1_174, %c0_175, %c0_176] {strides = array<i32: 2, 1, 1>} : memref<18x9x4xf32, #tpu.memory_space<vmem>>, vector<8x8x4xf32>
    %164 = vector.shape_cast %163 : vector<8x8x4xf32> to vector<64x4xf32>
    %165 = arith.truncf %164 : vector<64x4xf32> to vector<64x4xbf16>
    %c0_177 = arith.constant 0 : index
    %c0_178 = arith.constant 0 : index
    %166 = vector.load %arg8[%c0_177, %c0_178] : memref<4x8xbf16, #tpu.memory_space<vmem>>, vector<4x8xbf16>
    %cst_179 = arith.constant dense<0.000000e+00> : vector<64x8xf32>
    %167 = tpu.matmul %165, %166, %cst_179 {dimension_numbers = #tpu.dot_dimension_numbers<[1], [0], [0], [1], [0, 0, 1, 1], [], []>} : vector<64x4xbf16>, vector<4x8xbf16>, vector<64x8xf32> -> vector<64x8xf32>
    %168 = arith.addf %167, %162 : vector<64x8xf32>
    %169 = vector.shape_cast %168 : vector<64x8xf32> to vector<1x8x8x8xf32>
    %c0_180 = arith.constant 0 : index
    %c0_181 = arith.constant 0 : index
    %c0_182 = arith.constant 0 : index
    %c0_183 = arith.constant 0 : index
    %170 = vector.load %arg9[%c0_180, %c0_181, %c0_182, %c0_183] : memref<1x8x8x8xf32, #tpu.memory_space<vmem>>, vector<1x8x8x8xf32>
    tpu.vector_store %arg9[%c0_180, %c0_181, %c0_182, %c0_183], %169 {strides = array<i32>} : memref<1x8x8x8xf32, #tpu.memory_space<vmem>>, vector<1x8x8x8xf32>,
    return
  }
  func.func @transform_0(%arg0: i32) -> (i32, i32, i32, i32) {
    %c0_i32 = arith.constant 0 : i32
    %c0_i32_0 = arith.constant 0 : i32
    %c0_i32_1 = arith.constant 0 : i32
    %c0_i32_2 = arith.constant 0 : i32
    return %arg0, %c0_i32, %c0_i32_0, %c0_i32_1 : i32, i32, i32, i32
  }
  func.func @transform_1(%arg0: i32) -> (i32, i32) {
    %c0_i32 = arith.constant 0 : i32
    %c0_i32_0 = arith.constant 0 : i32
    %c0_i32_1 = arith.constant 0 : i32
    return %c0_i32, %c0_i32_0 : i32, i32
  }
  func.func @transform_2(%arg0: i32) -> (i32, i32) {
    %c0_i32 = arith.constant 0 : i32
    %c0_i32_0 = arith.constant 0 : i32
    %c0_i32_1 = arith.constant 0 : i32
    return %c0_i32, %c0_i32_0 : i32, i32
  }
  func.func @transform_3(%arg0: i32) -> (i32, i32, i32) {
    %c0_i32 = arith.constant 0 : i32
    %c0_i32_0 = arith.constant 0 : i32
    %c0_i32_1 = arith.constant 0 : i32
    %c0_i32_2 = arith.constant 0 : i32
    return %c0_i32, %c0_i32_0, %c0_i32_1 : i32, i32, i32
  }
  func.func @transform_4(%arg0: i32) -> (i32, i32) {
    %c0_i32 = arith.constant 0 : i32
    %c0_i32_0 = arith.constant 0 : i32
    %c0_i32_1 = arith.constant 0 : i32
    return %c0_i32, %c0_i32_0 : i32, i32
  }
  func.func @transform_5(%arg0: i32) -> (i32, i32) {
    %c0_i32 = arith.constant 0 : i32
    %c0_i32_0 = arith.constant 0 : i32
    %c0_i32_1 = arith.constant 0 : i32
    return %c0_i32, %c0_i32_0 : i32, i32
  }
  func.func @transform_6(%arg0: i32) -> (i32, i32, i32) {
    %c0_i32 = arith.constant 0 : i32
    %c0_i32_0 = arith.constant 0 : i32
    %c0_i32_1 = arith.constant 0 : i32
    %c0_i32_2 = arith.constant 0 : i32
    return %c0_i32, %c0_i32_0, %c0_i32_1 : i32, i32, i32
  }
  func.func @transform_7(%arg0: i32) -> (i32, i32) {
    %c0_i32 = arith.constant 0 : i32
    %c0_i32_0 = arith.constant 0 : i32
    %c0_i32_1 = arith.constant 0 : i32
    return %c0_i32, %c0_i32_0 : i32, i32
  }
  func.func @transform_8(%arg0: i32) -> (i32, i32, i32, i32) {
    %c0_i32 = arith.constant 0 : i32
    %c0_i32_0 = arith.constant 0 : i32
    %c0_i32_1 = arith.constant 0 : i32
    %c0_i32_2 = arith.constant 0 : i32
    return %arg0, %c0_i32, %c0_i32_0, %c0_i32_1 : i32, i32, i32, i32
  }
}

</mosaic_0001>

<bundles_post_ra>
// kernel: tpu_custom_call.1
= control target key start
LH: loop header
LB: loop body
LE: loop exit
PB: predicated region body
PF: predicated region fallthrough
CT: control target
= control target key end

     0   :  { %13 = vsyncpa [#allocation7], 0  ;;  %s4255_s0 = inlined_call_operand.vmem [shape: f32[2,16,16,4], index: 0, kind: input, shape index: {}]   ;;  %s4256_s1 = inlined_call_operand.vmem [shape: f32[1,4], index: 1, kind: input, shape index: {}]   ;;  %s4257_s2 = inlined_call_operand.vmem [shape: f32[1,4], index: 2, kind: input, shape index: {}]   ;;  %s4258_s3 = inlined_call_operand.vmem [shape: bf16[9,4,8], index: 3, kind: input, shape index: {}]   ;;  %s4259_s4 = inlined_call_operand.vmem [shape: f32[1,8], index: 4, kind: input, shape index: {}]   ;;  %s4260_s5 = inlined_call_operand.vmem [shape: f32[1,8], index: 5, kind: input, shape index: {}]   ;;  %s4261_s6 = inlined_call_operand.vmem [shape: bf16[9,8,8], index: 6, kind: input, shape index: {}]   ;;  %s4262_s7 = inlined_call_operand.vmem [shape: bf16[4,8], index: 7, kind: input, shape index: {}]   ;;  %s4263_s8 = inlined_call_operand.hbm [shape: f32[2,8,8,8], index: 8, kind: output, shape index: {}]  }
   0x1   :  { %15 = vsyncpa [#allocation7 + $0x1], 0  ;;  %s3372_s27 = smov 0   ;;  %s3374_s28 = smov 0  }
   0x2   :  { %s3376_s29 = smov 0   ;;  %s3378_s30 = smov 0  }
   0x3 LB: > { %s3393_s9 = sadd.s32 4294967295, %s3321_s30   ;;  %s2802_s10 = sadd.s32 4294967294, %s3321_s30   ;;  %s3321_s30 = sphi %s3378_s30, %s4275_s30   ;;  %s3317_s29 = sphi %s3376_s29, %s4274_s29   ;;  %s3313_s28 = sphi %s3374_s28, %s4273_s28   ;;  %s3309_s27 = sphi %s3372_s27, %s4272_s27  }
   0x4   : > { %s3397_s11 = sadd.s32 1, %s3321_s30   ;;  %s201_s12 = sadd.s32 1, %s3317_s29 }
   0x5   : > { %s198_s13 = ssub.s32 %s3321_s30, %s3397_s11  ;;  %p211_p0 = scmp.ne.s32.totalorder %s3317_s29, %s3313_s28 }
   0x6   : > { %p199_p1 = scmp.eq.s32.totalorder %s198_s13, 0  ;;  %p212_p2 = scmp.eq.s32.totalorder %s3393_s9, 1 }
   0x7   : > { %p217_p3 = scmp.ne.s32.totalorder %s3313_s28, %s3309_s27  ;;  %p218_p4 = scmp.eq.s32.totalorder %s2802_s10, 1 }
   0x8   : > { %s3408_s14 = scalar_select %p199_p1, %s3317_s29, %s201_s12  }
   0x9   : > { %p3410_p5 = por %p212_p2, %p211_p0  ;;  %p3414_p6 = por %p218_p4, %p217_p3 }
   0xa   : > { %p2805_p7 = scmp.ge.s32.totalorder %s3321_s30, 1  ;;  %p265_p8 = scmp.lt.s32.totalorder %s3321_s30, 3 }
   0xc   : > { %p266_p9 = pnand %p2805_p7, %p265_p8 }
   0xe   : > { %269 = sbr.rel (%p266_p9) target bundleno = 641 (0x281), region = 52 }
  0x13   : > { %v2811_v0 = vld [vmem:[%s4258_s3 + $0x2] sm:$0x3]  ;;  %vm780_vm0 = vcmask 1041408   ;;  %p299_p10 = scmp.lt.s32.totalorder %s3393_s9, 1  ;;  %vm447_vm1 = vcmask 31744   ;;  %vm456_vm2 = vcmask 24576  }
  0x14   : > { %3200 = vmatprep.subr.msk.bf16.mxu1 %vm780_vm0, %v2811_v0  ;;  %3199 = vmatprep.subr.msk.bf16.mxu0 %vm780_vm0, %v2811_v0  ;;  %v782_v1 = vsel %vm780_vm0, %v2811_v0, 0  ;;  %v3323_v2 = vmov 0.0   ;;  %v3505_v3 = vld [vmem:[%s4258_s3] sm:$0x3]  ;;  %v3510_v4 = vld [vmem:[%s4258_s3 + $0x4] sm:$0x3] }
  0x15   : > { %3198 = vmatpush3.bf16.msra.mxu1 %v782_v1  ;;  %3008 = vmatpush3.bf16.msra.mxu0 %v782_v1  ;;  %s3428_s19 = scalar_select %p299_p10, %s3393_s9, 1  ;;  %448 = vst.msk [vmem:[#allocation2] sm:$0xff] %vm447_vm1, %v3323_v2  ;;  %449 = vst.msk [vmem:[#allocation2 + $0x8] sm:$0xff] %vm447_vm1, %v3323_v2  ;;  %vm450_vm3 = vcmask 25600   ;;  %v3526_v5 = vld [vmem:[%s4256_s1] ss:$0 sm:$0xff] }
  0x16   : > { %453 = vst.msk [vmem:[#allocation2 + $0x198] sm:$0xff] %vm447_vm1, %v3323_v2  ;;  %454 = vst.msk [vmem:[#allocation2 + $0x1a0] sm:$0xff] %vm447_vm1, %v3323_v2  ;;  %3201 = vmatprep.subr.msk.bf16.mxu1 %vm780_vm0, %v3505_v3  ;;  %3202 = vmatprep.subr.msk.bf16.mxu0 %vm780_vm0, %v3510_v4  ;;  %v3540_v6 = vld [vmem:[%s4257_s2] ss:$0 sm:$0xff]  ;;  %vm1685_vm4 = vcmask 64512   ;;  %vm1692_vm5 = vcmask 57344  }
  0x17   : > { %476 = vst.msk [vmem:[#allocation2 + $0x29] sm:$0x1] %vm456_vm2, %v3323_v2  ;;  %477 = vst.msk [vmem:[#allocation2 + $0x41] sm:$0x1] %vm456_vm2, %v3323_v2  ;;  %s2910_s24 = sshll.u32 %s3428_s19, 8  ;;  %vm1687_vm6 = vcmask 58368  }
  0x18   : > { %478 = vst.msk [vmem:[#allocation2 + $0x59] sm:$0x1] %vm456_vm2, %v3323_v2  ;;  %479 = vst.msk [vmem:[#allocation2 + $0x71] sm:$0x1] %vm456_vm2, %v3323_v2  ;;  %s3535_s13 = scalar_lea.vmem %s4255_s0, %s2910_s24  ;;  %vm1761_vm7 = vcmask 1043456   ;;  %s2911_s19 = sshll.u32 %s3393_s9, 10 }
  0x19   : > { %480 = vst.msk [vmem:[#allocation2 + $0x89] sm:$0x1] %vm456_vm2, %v3323_v2  ;;  %481 = vst.msk [vmem:[#allocation2 + $0xa1] sm:$0x1] %vm456_vm2, %v3323_v2  ;;  %v307_v7 = vld [vmem:[%s3535_s13 + $0x10] sm:$0xff]  ;;  %v308_v8 = vld [vmem:[%s3535_s13 + $0x18] sm:$0xff]  ;;  %s4205_s23 = scalar_lea.hbm %s4263_s8, %s2911_s19 }
  0x1a   : > { %482 = vst.msk [vmem:[#allocation2 + $0xb9] sm:$0x1] %vm456_vm2, %v3323_v2  ;;  %483 = vst.msk [vmem:[#allocation2 + $0xd1] sm:$0x1] %vm456_vm2, %v3323_v2  ;;  %v319_v9 = vld [vmem:[%s3535_s13 + $0x70] sm:$0xff]  ;;  %v346_v10 = vmul.f32 %v3526_v5, %v307_v7  ;;  %v347_v11 = vmul.f32 %v3526_v5, %v308_v8  ;;  %v320_v12 = vld [vmem:[%s3535_s13 + $0x78] sm:$0xff] }
  0x1b   : > { %484 = vst.msk [vmem:[#allocation2 + $0xe9] sm:$0x1] %vm456_vm2, %v3323_v2  ;;  %485 = vst.msk [vmem:[#allocation2 + $0x101] sm:$0x1] %vm456_vm2, %v3323_v2  ;;  %v323_v13 = vld [vmem:[%s3535_s13 + $0x90] sm:$0xff]  ;;  %v324_v14 = vld [vmem:[%s3535_s13 + $0x98] sm:$0xff]  ;;  %v358_v15 = vmul.f32 %v3526_v5, %v319_v9  ;;  %v359_v24 = vmul.f32 %v3526_v5, %v320_v12 }
  0x1c   : > { %486 = vst.msk [vmem:[#allocation2 + $0x119] sm:$0x1] %vm456_vm2, %v3323_v2  ;;  %487 = vst.msk [vmem:[#allocation2 + $0x131] sm:$0x1] %vm456_vm2, %v3323_v2  ;;  %v311_v16 = vld [vmem:[%s3535_s13 + $0x30] sm:$0xff]  ;;  %v312_v17 = vld [vmem:[%s3535_s13 + $0x38] sm:$0xff]  ;;  %v385_v19 = vadd.f32 %v3540_v6, %v346_v10  ;;  %v386_v20 = vadd.f32 %v3540_v6, %v347_v11  ;;  %v362_v25 = vmul.f32 %v3526_v5, %v323_v13 }
  0x1d   : > { %488 = vst.msk [vmem:[#allocation2 + $0x149] sm:$0x1] %vm456_vm2, %v3323_v2  ;;  %489 = vst.msk [vmem:[#allocation2 + $0x161] sm:$0x1] %vm456_vm2, %v3323_v2  ;;  %v315_v18 = vld [vmem:[%s3535_s13 + $0x50] sm:$0xff]  ;;  %v397_v22 = vadd.f32 %v3540_v6, %v358_v15  ;;  %v316_v23 = vld [vmem:[%s3535_s13 + $0x58] sm:$0xff]  ;;  %v363_v26 = vmul.f32 %v3526_v5, %v324_v14  ;;  %v350_v31 = vmul.f32 %v3526_v5, %v311_v16 }
  0x1e   : > { %490 = vst.msk [vmem:[#allocation2 + $0x179] sm:$0x1] %vm456_vm2, %v3323_v2  ;;  %491 = vst.msk [vmem:[#allocation2 + $0x191] sm:$0x1] %vm456_vm2, %v3323_v2  ;;  %v634_v21 = vld [vmem:[#allocation2 + $0x1] ss:$2 sm:$0xff]  ;;  %v351_v32 = vmul.f32 %v3526_v5, %v312_v17  ;;  %v354_v33 = vmul.f32 %v3526_v5, %v315_v18  ;;  %v355_v34 = vmul.f32 %v3526_v5, %v316_v23 }
  0x1f   : > { %458 = vst.msk [vmem:[#allocation2 + $0x18] sm:$0x1] %vm456_vm2, %v3323_v2  ;;  %459 = vst.msk [vmem:[#allocation2 + $0x30] sm:$0x1] %vm456_vm2, %v3323_v2  ;;  %v327_v27 = vld [vmem:[%s3535_s13 + $0xb0] sm:$0xff]  ;;  %v417_v28 = vmax.f32 %v385_v19, 0.0  ;;  %v398_v36 = vadd.f32 %v3540_v6, %v359_v24  ;;  %v401_v37 = vadd.f32 %v3540_v6, %v362_v25  ;;  %v402_v38 = vadd.f32 %v3540_v6, %v363_v26 }
  0x20   : > { %460 = vst.msk [vmem:[#allocation2 + $0x48] sm:$0x1] %vm456_vm2, %v3323_v2  ;;  %461 = vst.msk [vmem:[#allocation2 + $0x60] sm:$0x1] %vm456_vm2, %v3323_v2  ;;  %v418_v29 = vmax.f32 %v386_v20, 0.0  ;;  %v429_v30 = vmax.f32 %v397_v22, 0.0  ;;  %v366_v35 = vmul.f32 %v3526_v5, %v327_v27  ;;  %v389_v39 = vadd.f32 %v3540_v6, %v350_v31 }
  0x21   : > { %462 = vst.msk [vmem:[#allocation2 + $0x78] sm:$0x1] %vm456_vm2, %v3323_v2  ;;  %463 = vst.msk [vmem:[#allocation2 + $0x90] sm:$0x1] %vm456_vm2, %v3323_v2  ;;  %v390_v40 = vadd.f32 %v3540_v6, %v351_v32  ;;  %v393_v41 = vadd.f32 %v3540_v6, %v354_v33  ;;  %v394_v42 = vadd.f32 %v3540_v6, %v355_v34  ;;  %v430_v44 = vmax.f32 %v398_v36, 0.0  ;;  %v328_v48 = vld [vmem:[%s3535_s13 + $0xb8] sm:$0xff] }
  0x22   : > { %464 = vst.msk [vmem:[#allocation2 + $0xa8] sm:$0x1] %vm456_vm2, %v3323_v2  ;;  %465 = vst.msk [vmem:[#allocation2 + $0xc0] sm:$0x1] %vm456_vm2, %v3323_v2  ;;  %v405_v43 = vadd.f32 %v3540_v6, %v366_v35  ;;  %v433_v45 = vmax.f32 %v401_v37, 0.0  ;;  %v434_v46 = vmax.f32 %v402_v38, 0.0  ;;  %v367_v55 = vmul.f32 %v3526_v5, %v328_v48 }
  0x23   : > { %466 = vst.msk [vmem:[#allocation2 + $0xd8] sm:$0x1] %vm456_vm2, %v3323_v2  ;;  %467 = vst.msk [vmem:[#allocation2 + $0xf0] sm:$0x1] %vm456_vm2, %v3323_v2  ;;  %v421_v47 = vmax.f32 %v389_v39, 0.0  ;;  %v331_v49 = vld [vmem:[%s3535_s13 + $0xd0] sm:$0xff] }
  0x24   : > { %468 = vst.msk [vmem:[#allocation2 + $0x108] sm:$0x1] %vm456_vm2, %v3323_v2  ;;  %469 = vst.msk [vmem:[#allocation2 + $0x120] sm:$0x1] %vm456_vm2, %v3323_v2  ;;  %v422_v51 = vmax.f32 %v390_v40, 0.0  ;;  %v425_v52 = vmax.f32 %v393_v41, 0.0  ;;  %v370_v56 = vmul.f32 %v3526_v5, %v331_v49  ;;  %v406_v62 = vadd.f32 %v3540_v6, %v367_v55 }
  0x25   : > { %470 = vst.msk [vmem:[#allocation2 + $0x138] sm:$0x1] %vm456_vm2, %v3323_v2  ;;  %471 = vst.msk [vmem:[#allocation2 + $0x150] sm:$0x1] %vm456_vm2, %v3323_v2  ;;  %v426_v53 = vmax.f32 %v394_v42, 0.0  ;;  %v332_v54 = vld [vmem:[%s3535_s13 + $0xd8] sm:$0xff] }
  0x26   : > { %472 = vst.msk [vmem:[#allocation2 + $0x168] sm:$0x1] %vm456_vm2, %v3323_v2  ;;  %473 = vst.msk [vmem:[#allocation2 + $0x180] sm:$0x1] %vm456_vm2, %v3323_v2  ;;  %v371_v57 = vmul.f32 %v3526_v5, %v332_v54  ;;  %v437_v58 = vmax.f32 %v405_v43, 0.0  ;;  %v305_v61 = vld [vmem:[%s3535_s13] sm:$0xff]  ;;  %v409_v7 = vadd.f32 %v3540_v6, %v370_v56 }
  0x27   : > { %457 = vst.msk [vmem:[#allocation2] sm:$0x1] %vm456_vm2, %v3323_v2  ;;  %474 = vst.msk [vmem:[#allocation2 + $0x198] sm:$0x1] %vm456_vm2, %v3323_v2  ;;  %v344_v1 = vmul.f32 %v3526_v5, %v305_v61  ;;  %v438_v10 = vmax.f32 %v406_v62, 0.0  ;;  %v306_v11 = vld [vmem:[%s3535_s13 + $0x8] sm:$0xff] }
  0x28   : > { %451 = vst.msk [vmem:[#allocation2 + $0x10] sm:$0x3] %vm450_vm3, %v3323_v2  ;;  %455 = vst.msk [vmem:[#allocation2 + $0x1a8] sm:$0x3] %vm450_vm3, %v3323_v2  ;;  %v410_v8 = vadd.f32 %v3540_v6, %v371_v57  ;;  %v309_v12 = vld [vmem:[%s3535_s13 + $0x20] sm:$0xff]  ;;  %v441_v14 = vmax.f32 %v409_v7, 0.0  ;;  %v345_v17 = vmul.f32 %v3526_v5, %v306_v11 }
  0x29   : > { %475 = vst.msk [vmem:[#allocation2 + $0x11] sm:$0x1] %vm456_vm2, %v3323_v2  ;;  %492 = vst.msk [vmem:[#allocation2 + $0x1a9] sm:$0x1] %vm456_vm2, %v3323_v2  ;;  %v383_v13 = vadd.f32 %v3540_v6, %v344_v1  ;;  %v310_v16 = vld [vmem:[%s3535_s13 + $0x28] sm:$0xff]  ;;  %v348_v18 = vmul.f32 %v3526_v5, %v309_v12  ;;  %v313_v19 = vld [vmem:[%s3535_s13 + $0x40] sm:$0xff] }
  0x2a   : > { %705 = vst.msk [vmem:[#allocation5] sm:$0xff] %vm447_vm1, %v634_v21  ;;  %496 = vst.msk [vmem:[#allocation2 + $0x31] sm:$0xff] %vm447_vm1, %v417_v28  ;;  %v442_v15 = vmax.f32 %v410_v8, 0.0  ;;  %v314_v20 = vld [vmem:[%s3535_s13 + $0x48] sm:$0xff]  ;;  %v349_v21 = vmul.f32 %v3526_v5, %v310_v16  ;;  %v317_v23 = vld [vmem:[%s3535_s13 + $0x60] sm:$0xff]  ;;  %v352_v25 = vmul.f32 %v3526_v5, %v313_v19  ;;  %v384_v28 = vadd.f32 %v3540_v6, %v345_v17  ;;  %s3324_s25 = smov [#allocation6]  }
  0x2b   : > { %497 = vst.msk [vmem:[#allocation2 + $0x39] sm:$0xff] %vm447_vm1, %v418_v29  ;;  %508 = vst.msk [vmem:[#allocation2 + $0xc1] sm:$0xff] %vm447_vm1, %v429_v30  ;;  %v415_v22 = vmax.f32 %v383_v13, 0.0  ;;  %v318_v24 = vld [vmem:[%s3535_s13 + $0x68] sm:$0xff]  ;;  %v353_v26 = vmul.f32 %v3526_v5, %v314_v20  ;;  %v321_v27 = vld [vmem:[%s3535_s13 + $0x80] sm:$0xff]  ;;  %v387_v29 = vadd.f32 %v3540_v6, %v348_v18  ;;  %v356_v30 = vmul.f32 %v3526_v5, %v317_v23  ;;  %s3265_s26 = sshll.u32 %s3324_s25, 4  ;;  %s3266_s26 = int_to_ptr.vmem [resolvable:$false] %s3265_s26 }
  0x2c   : > { %509 = vst.msk [vmem:[#allocation2 + $0xc9] sm:$0xff] %vm447_vm1, %v430_v44  ;;  %512 = vst.msk [vmem:[#allocation2 + $0xf1] sm:$0xff] %vm447_vm1, %v433_v45  ;;  %v322_v31 = vld [vmem:[%s3535_s13 + $0x88] sm:$0xff]  ;;  %v325_v32 = vld [vmem:[%s3535_s13 + $0xa0] sm:$0xff]  ;;  %v3630_v37 = vsel %vm780_vm0, %v3510_v4, 0  ;;  %v388_v38 = vadd.f32 %v3540_v6, %v349_v21  ;;  %v357_v39 = vmul.f32 %v3526_v5, %v318_v24  ;;  %v391_v40 = vadd.f32 %v3540_v6, %v352_v25  ;;  %s3267_s10 = scalar_lea.vmem %s3266_s26, 2048 }
  0x2d   : > { %513 = vst.msk [vmem:[#allocation2 + $0xf9] sm:$0xff] %vm447_vm1, %v434_v46  ;;  %500 = vst.msk [vmem:[#allocation2 + $0x61] sm:$0xff] %vm447_vm1, %v421_v47  ;;  %v326_v33 = vld [vmem:[%s3535_s13 + $0xa8] sm:$0xff]  ;;  %v416_v44 = vmax.f32 %v384_v28, 0.0  ;;  %v392_v4 = vadd.f32 %v3540_v6, %v353_v26  ;;  %v360_v45 = vmul.f32 %v3526_v5, %v321_v27  ;;  %v419_v46 = vmax.f32 %v387_v29, 0.0 }
  0x2e   : > { %v526_v59 = vld [vmem:[#allocation2] ss:$2 sm:$0xff]  ;;  %501 = vst.msk [vmem:[#allocation2 + $0x69] sm:$0xff] %vm447_vm1, %v422_v51  ;;  %504 = vst.msk [vmem:[#allocation2 + $0x91] sm:$0xff] %vm447_vm1, %v425_v52  ;;  %v420_v47 = vmax.f32 %v388_v38, 0.0  ;;  %v423_v48 = vmax.f32 %v391_v40, 0.0  ;;  %v361_v49 = vmul.f32 %v3526_v5, %v322_v31  ;;  %v364_v54 = vmul.f32 %v3526_v5, %v325_v32 }
  0x2f   : > { %505 = vst.msk [vmem:[#allocation2 + $0x99] sm:$0xff] %vm447_vm1, %v426_v53  ;;  %597 = vst.msk [vmem:[#allocation4] sm:$0xff] %vm447_vm1, %v526_v59  ;;  %v528_v63 = vld [vmem:[#allocation2 + $0x10] ss:$2 sm:$0x1]  ;;  %v395_v53 = vadd.f32 %v3540_v6, %v356_v30  ;;  %v365_v55 = vmul.f32 %v3526_v5, %v326_v33  ;;  %v424_v8 = vmax.f32 %v392_v4, 0.0 }
  0x30   : > { %516 = vst.msk [vmem:[#allocation2 + $0x121] sm:$0xff] %vm447_vm1, %v437_v58  ;;  %517 = vst.msk [vmem:[#allocation2 + $0x129] sm:$0xff] %vm447_vm1, %v438_v10  ;;  %v403_v10 = vadd.f32 %v3540_v6, %v364_v54  ;;  %v2830_v32 = vld [vmem:[%s4258_s3 + $0x8] sm:$0x3]  ;;  %v2825_v4 = vld [vmem:[%s4258_s3 + $0x6] sm:$0x3] }
  0x31   : > { %598 = vst.msk [vmem:[#allocation4 + $0x8] sm:$0x1] %vm456_vm2, %v528_v63  ;;  %v754_v9 = vld [vmem:[#allocation5] sm:$0xff]  ;;  %v427_v13 = vmax.f32 %v395_v53, 0.0  ;;  %v3745_v54 = vld [vmem:[%s4258_s3 + $0xc] sm:$0x3] }
  0x32   : > { %v642_v50 = vld [vmem:[#allocation2 + $0x31] ss:$2 sm:$0xff]  ;;  %v534_v60 = vld [vmem:[#allocation2 + $0x30] ss:$2 sm:$0xff]  ;;  %520 = vst.msk [vmem:[#allocation2 + $0x151] sm:$0xff] %vm447_vm1, %v441_v14  ;;  %521 = vst.msk [vmem:[#allocation2 + $0x159] sm:$0xff] %vm447_vm1, %v442_v15  ;;  %v404_v14 = vadd.f32 %v3540_v6, %v365_v55 }
  0x33   : > { %709 = vst.msk [vmem:[#allocation5 + $0x20] sm:$0xff] %vm447_vm1, %v642_v50  ;;  %601 = vst.msk [vmem:[#allocation4 + $0x20] sm:$0xff] %vm447_vm1, %v534_v60  ;;  %v536_v0 = vld [vmem:[#allocation2 + $0x40] ss:$2 sm:$0x1]  ;;  %v396_v60 = vadd.f32 %v3540_v6, %v357_v39  ;;  %v435_v29 = vmax.f32 %v403_v10, 0.0 }
  0x34   : > { %602 = vst.msk [vmem:[#allocation4 + $0x28] sm:$0x1] %vm456_vm2, %v536_v0  ;;  %v666_v35 = vld [vmem:[#allocation2 + $0xc1] ss:$2 sm:$0xff]  ;;  %v674_v36 = vld [vmem:[#allocation2 + $0xf1] ss:$2 sm:$0xff]  ;;  %v399_v0 = vadd.f32 %v3540_v6, %v360_v45 }
  0x35   : > { %494 = vst.msk [vmem:[#allocation2 + $0x19] sm:$0xff] %vm447_vm1, %v415_v22  ;;  %721 = vst.msk [vmem:[#allocation5 + $0x80] sm:$0xff] %vm447_vm1, %v666_v35  ;;  %v650_v42 = vld [vmem:[#allocation2 + $0x61] ss:$2 sm:$0xff]  ;;  %v542_v50 = vld [vmem:[#allocation2 + $0x60] ss:$2 sm:$0xff] }
  0x36   : > { %725 = vst.msk [vmem:[#allocation5 + $0xa0] sm:$0xff] %vm447_vm1, %v674_v36  ;;  %v658_v43 = vld [vmem:[#allocation2 + $0x91] ss:$2 sm:$0xff]  ;;  %713 = vst.msk [vmem:[#allocation5 + $0x40] sm:$0xff] %vm447_vm1, %v650_v42  ;;  %v550_v51 = vld [vmem:[#allocation2 + $0x90] ss:$2 sm:$0xff] }
  0x37   : > { %717 = vst.msk [vmem:[#allocation5 + $0x60] sm:$0xff] %vm447_vm1, %v658_v43  ;;  %v558_v52 = vld [vmem:[#allocation2 + $0xc0] ss:$2 sm:$0xff]  ;;  %495 = vst.msk [vmem:[#allocation2 + $0x21] sm:$0xff] %vm447_vm1, %v416_v44  ;;  %v682_v61 = vld [vmem:[#allocation2 + $0x121] ss:$2 sm:$0xff] }
  0x38   : > { %v3649_v56 = vld [vmem:[#allocation4 + $0x1] sm:$0xff]  ;;  %605 = vst.msk [vmem:[#allocation4 + $0x40] sm:$0xff] %vm447_vm1, %v542_v50  ;;  %609 = vst.msk [vmem:[#allocation4 + $0x60] sm:$0xff] %vm447_vm1, %v550_v51  ;;  %v544_v58 = vld [vmem:[#allocation2 + $0x70] ss:$2 sm:$0x1] }
  0x39   : > { %v552_v59 = vld [vmem:[#allocation2 + $0xa0] ss:$2 sm:$0x1]  ;;  %613 = vst.msk [vmem:[#allocation4 + $0x80] sm:$0xff] %vm447_vm1, %v558_v52  ;;  %498 = vst.msk [vmem:[#allocation2 + $0x49] sm:$0xff] %vm447_vm1, %v419_v46  ;;  %v428_v18 = vmax.f32 %v396_v60, 0.0 }
  0x3a   : > { %v3626_v34 = vld [vmem:[#allocation5 + $0x20] sm:$0xff]  ;;  %499 = vst.msk [vmem:[#allocation2 + $0x51] sm:$0xff] %vm447_vm1, %v420_v47  ;;  %502 = vst.msk [vmem:[#allocation2 + $0x79] sm:$0xff] %vm447_vm1, %v423_v48  ;;  %v574_v63 = vld [vmem:[#allocation2 + $0x120] ss:$2 sm:$0xff]  ;;  %v431_v24 = vmax.f32 %v399_v0, 0.0 }
  0x3b   : > { %v762_v41 = vpack.c.bf16 %v3626_v34, %v754_v9  ;;  %v3651_v57 = vld [vmem:[#allocation4 + $0x21] sm:$0xff]  ;;  %606 = vst.msk [vmem:[#allocation4 + $0x48] sm:$0x1] %vm456_vm2, %v544_v58  ;;  %610 = vst.msk [vmem:[#allocation4 + $0x68] sm:$0x1] %vm456_vm2, %v552_v59  ;;  %v400_v9 = vadd.f32 %v3540_v6, %v361_v49  ;;  %v436_v33 = vmax.f32 %v404_v14, 0.0 }
  0x3c   : > { %v566_v62 = vld [vmem:[#allocation2 + $0xf0] ss:$2 sm:$0xff]  ;;  %v690_v1 = vld [vmem:[#allocation2 + $0x151] ss:$2 sm:$0xff]  ;;  %729 = vst.msk [vmem:[#allocation5 + $0xc0] sm:$0xff] %vm447_vm1, %v682_v61  ;;  %621 = vst.msk [vmem:[#allocation4 + $0xc0] sm:$0xff] %vm447_vm1, %v574_v63  ;;  %v937_v22 = vpack.c.bf16 %v3651_v57, %v3649_v56 }
  0x3d   : > { %3009 = vmatprep.mubr.msk.bf16.mxu0 %vm447_vm1, %v762_v41  ;;  %617 = vst.msk [vmem:[#allocation4 + $0xa0] sm:$0xff] %vm447_vm1, %v566_v62  ;;  %v560_v7 = vld [vmem:[#allocation2 + $0xd0] ss:$2 sm:$0x1]  ;;  %733 = vst.msk [vmem:[#allocation5 + $0xe0] sm:$0xff] %vm447_vm1, %v690_v1  ;;  %v432_v28 = vmax.f32 %v400_v9, 0.0 }
  0x3e   : > { %v568_v11 = vld [vmem:[#allocation2 + $0x100] ss:$2 sm:$0x1]  ;;  %614 = vst.msk [vmem:[#allocation4 + $0x88] sm:$0x1] %vm456_vm2, %v560_v7  ;;  %v3671_v15 = vld [vmem:[#allocation5 + $0x80] sm:$0xff] }
  0x3f   : > { %v582_v12 = vld [vmem:[#allocation2 + $0x150] ss:$2 sm:$0xff]  ;;  %618 = vst.msk [vmem:[#allocation4 + $0xa8] sm:$0x1] %vm456_vm2, %v568_v11  ;;  %v638_v27 = vld [vmem:[#allocation2 + $0x19] ss:$2 sm:$0xff] }
  0x40   : > { %v3673_v16 = vld [vmem:[#allocation5 + $0xa0] sm:$0xff]  ;;  %625 = vst.msk [vmem:[#allocation4 + $0xe0] sm:$0xff] %vm447_vm1, %v582_v12  ;;  %503 = vst.msk [vmem:[#allocation2 + $0x81] sm:$0xff] %vm447_vm1, %v424_v8  ;;  %v584_v23 = vld [vmem:[#allocation2 + $0x160] ss:$2 sm:$0x1] }
  0x41   : > { %v576_v17 = vld [vmem:[#allocation2 + $0x130] ss:$2 sm:$0x1]  ;;  %v764_v19 = vpack.c.bf16 %v3673_v16, %v3671_v15  ;;  %506 = vst.msk [vmem:[#allocation2 + $0xa9] sm:$0xff] %vm447_vm1, %v427_v13  ;;  %v530_v26 = vld [vmem:[#allocation2 + $0x18] ss:$2 sm:$0xff] }
  0x42   : > { %v3680_v20 = vld [vmem:[#allocation5 + $0x40] sm:$0xff]  ;;  %622 = vst.msk [vmem:[#allocation4 + $0xc8] sm:$0x1] %vm456_vm2, %v576_v17  ;;  %626 = vst.msk [vmem:[#allocation4 + $0xe8] sm:$0x1] %vm456_vm2, %v584_v23  ;;  %v862_v44 = vsel %vm780_vm0, %v3505_v3, 0 }
  0x43   : > { %v3682_v21 = vld [vmem:[#allocation5 + $0x60] sm:$0xff]  ;;  %507 = vst.msk [vmem:[#allocation2 + $0xb1] sm:$0xff] %vm447_vm1, %v428_v18  ;;  %3013 = vmatprep.mubr.msk.bf16.mxu1 %vm447_vm1, %v764_v19  ;;  %599 = vst.msk [vmem:[#allocation4 + $0x10] sm:$0xff] %vm447_vm1, %v530_v26  ;;  %v329_v50 = vld [vmem:[%s3535_s13 + $0xc0] sm:$0xff]  ;;  %v1162_v56 = vsel %vm780_vm0, %v2830_v32, 0  ;;  %v1059_v8 = vsel %vm780_vm0, %v2825_v4, 0 }
  0x44   : > { %v763_v25 = vpack.c.bf16 %v3682_v21, %v3680_v20  ;;  %v741_v30 = vld [vmem:[#allocation4] sm:$0xff]  ;;  %707 = vst.msk [vmem:[#allocation5 + $0x10] sm:$0xff] %vm447_vm1, %v638_v27  ;;  %510 = vst.msk [vmem:[#allocation2 + $0xd9] sm:$0xff] %vm447_vm1, %v431_v24  ;;  %v368_v55 = vmul.f32 %v3526_v5, %v329_v50  ;;  %v330_v60 = vld [vmem:[%s3535_s13 + $0xc8] sm:$0xff] }
  0x45   : > { %v3693_v31 = vld [vmem:[#allocation4 + $0x20] sm:$0xff]  ;;  %511 = vst.msk [vmem:[#allocation2 + $0xe1] sm:$0xff] %vm447_vm1, %v432_v28  ;;  %514 = vst.msk [vmem:[#allocation2 + $0x109] sm:$0xff] %vm447_vm1, %v435_v29  ;;  %v333_v0 = vld [vmem:[%s3535_s13 + $0xe0] sm:$0xff]  ;;  %v369_v1 = vmul.f32 %v3526_v5, %v330_v60 }
  0x46   : > { %3010 = vmatmul.mubr.msk.bf16.vlgmr.msra.gmra.mxu0 %vm447_vm1, %v763_v25  ;;  %v538_v35 = vld [vmem:[#allocation2 + $0x48] ss:$2 sm:$0xff]  ;;  %515 = vst.msk [vmem:[#allocation2 + $0x111] sm:$0xff] %vm447_vm1, %v436_v33  ;;  %v749_v41 = vpack.c.bf16 %v3693_v31, %v741_v30  ;;  %v407_v7 = vadd.f32 %v3540_v6, %v368_v55  ;;  %v372_v12 = vmul.f32 %v3526_v5, %v333_v0  ;;  %v540_v28 = vld [vmem:[#allocation2 + $0x58] ss:$2 sm:$0x1] }
  0x47   : > { %v3704_v36 = vld [vmem:[#allocation5 + $0xc0] sm:$0xff]  ;;  %3028 = vmatpush3.bf16.msra.mxu0 %v3630_v37  ;;  %3029 = vmatprep.mubr.msk.bf16.mxu0 %vm447_vm1, %v937_v22  ;;  %603 = vst.msk [vmem:[#allocation4 + $0x30] sm:$0xff] %vm447_vm1, %v538_v35  ;;  %v546_v46 = vld [vmem:[#allocation2 + $0x78] ss:$2 sm:$0xff]  ;;  %v654_v49 = vld [vmem:[#allocation2 + $0x79] ss:$2 sm:$0xff]  ;;  %v408_v17 = vadd.f32 %v3540_v6, %v369_v1 }
  0x48   : > { %v3708_v38 = vld [vmem:[#allocation4 + $0x41] sm:$0xff]  ;;  %3204 = vmatprep.subr.msk.bf16.mxu0 %vm780_vm0, %v2830_v32  ;;  %607 = vst.msk [vmem:[#allocation4 + $0x50] sm:$0xff] %vm447_vm1, %v546_v46  ;;  %715 = vst.msk [vmem:[#allocation5 + $0x50] sm:$0xff] %vm447_vm1, %v654_v49  ;;  %v334_v14 = vld [vmem:[%s3535_s13 + $0xe8] sm:$0xff]  ;;  %v439_v18 = vmax.f32 %v407_v7, 0.0  ;;  %v411_v27 = vadd.f32 %v3540_v6, %v372_v12 }
  0x49   : > { %v3710_v39 = vld [vmem:[#allocation4 + $0x61] sm:$0xff]  ;;  %v532_v19 = vld [vmem:[#allocation2 + $0x28] ss:$2 sm:$0x1]  ;;  %v373_v26 = vmul.f32 %v3526_v5, %v334_v14  ;;  %v3789_v30 = vld [vmem:[%s4258_s3 + $0xa] sm:$0x3] }
  0x4a   : > { %v3714_v40 = vld [vmem:[#allocation5 + $0xe0] sm:$0xff]  ;;  %v938_v48 = vpack.c.bf16 %v3710_v39, %v3708_v38  ;;  %600 = vst.msk [vmem:[#allocation4 + $0x18] sm:$0x1] %vm456_vm2, %v532_v19  ;;  %v440_v32 = vmax.f32 %v408_v17, 0.0  ;;  %604 = vst.msk [vmem:[#allocation4 + $0x38] sm:$0x1] %vm456_vm2, %v540_v28 }
  0x4b   : > { %v3718_v42 = vld [vmem:[#allocation4 + $0x81] sm:$0xff]  ;;  %v765_v43 = vpack.c.bf16 %v3714_v40, %v3704_v36  ;;  %v1135_v24 = vld [vmem:[#allocation5 + $0x10] sm:$0xff]  ;;  %518 = vst.msk [vmem:[#allocation2 + $0x139] sm:$0xff] %vm447_vm1, %v439_v18  ;;  %v548_v33 = vld [vmem:[#allocation2 + $0x88] ss:$2 sm:$0x1] }
  0x4c   : > { %v646_v37 = vld [vmem:[#allocation2 + $0x49] ss:$2 sm:$0xff]  ;;  %v554_v52 = vld [vmem:[#allocation2 + $0xa8] ss:$2 sm:$0xff]  ;;  %v562_v62 = vld [vmem:[#allocation2 + $0xd8] ss:$2 sm:$0xff] }
  0x4d   : > { %v3727_v45 = vld [vmem:[#allocation4 + $0xa1] sm:$0xff]  ;;  %711 = vst.msk [vmem:[#allocation5 + $0x30] sm:$0xff] %vm447_vm1, %v646_v37  ;;  %3014 = vmatmul.mubr.msk.bf16.vlgmr.msra.gmra.mxu1 %vm447_vm1, %v765_v43  ;;  %611 = vst.msk [vmem:[#allocation4 + $0x70] sm:$0xff] %vm447_vm1, %v554_v52  ;;  %v670_v63 = vld [vmem:[#allocation2 + $0xd9] ss:$2 sm:$0xff]  ;;  %v443_v37 = vmax.f32 %v411_v27, 0.0 }
  0x4e   : > { %v3730_v47 = vld [vmem:[#allocation4 + $0x40] sm:$0xff]  ;;  %v939_v51 = vpack.c.bf16 %v3727_v45, %v3718_v42  ;;  %3018 = vmatpush3.bf16.msra.mxu1 %v862_v44  ;;  %3019 = vmatprep.mubr.msk.bf16.mxu1 %vm447_vm1, %v749_v41  ;;  %615 = vst.msk [vmem:[#allocation4 + $0x90] sm:$0xff] %vm447_vm1, %v562_v62  ;;  %723 = vst.msk [vmem:[#allocation5 + $0x90] sm:$0xff] %vm447_vm1, %v670_v63  ;;  %v412_v41 = vadd.f32 %v3540_v6, %v373_v26  ;;  %v556_v43 = vld [vmem:[#allocation2 + $0xb8] ss:$2 sm:$0x1] }
  0x4f   : > { %v3737_v3 = vld [vmem:[#allocation4 + $0x60] sm:$0xff]  ;;  %3203 = vmatprep.subr.msk.bf16.mxu1 %vm780_vm0, %v2825_v4  ;;  %3030 = vmatmul.mubr.msk.bf16.vlgmr.msra.gmra.mxu0 %vm447_vm1, %v938_v48  ;;  %608 = vst.msk [vmem:[#allocation4 + $0x58] sm:$0x1] %vm456_vm2, %v548_v33  ;;  %v336_v44 = vld [vmem:[%s3535_s13 + $0xf8] sm:$0xff]  ;;  %612 = vst.msk [vmem:[#allocation4 + $0x78] sm:$0x1] %vm456_vm2, %v556_v43 }
  0x50   : > { %v662_v53 = vld [vmem:[#allocation2 + $0xa9] ss:$2 sm:$0xff]  ;;  %v570_v10 = vld [vmem:[#allocation2 + $0x108] ss:$2 sm:$0xff]  ;;  %v750_v13 = vpack.c.bf16 %v3737_v3, %v3730_v47  ;;  %3048 = vmatpush3.bf16.msra.mxu0 %v1162_v56  ;;  %3033 = vmatprep.mubr.msk.bf16.mxu0 %vm447_vm1, %v939_v51  ;;  %519 = vst.msk [vmem:[#allocation2 + $0x141] sm:$0xff] %vm447_vm1, %v440_v32  ;;  %v375_v50 = vmul.f32 %v3526_v5, %v336_v44  ;;  %v444_v52 = vmax.f32 %v412_v41, 0.0 }
  0x51   : > { %v3750_v58 = vld [vmem:[#allocation4 + $0x80] sm:$0xff]  ;;  %719 = vst.msk [vmem:[#allocation5 + $0x70] sm:$0xff] %vm447_vm1, %v662_v53  ;;  %619 = vst.msk [vmem:[#allocation4 + $0xb0] sm:$0xff] %vm447_vm1, %v570_v10  ;;  %3206 = vmatprep.subr.msk.bf16.mxu0 %vm780_vm0, %v3745_v54  ;;  %v564_v49 = vld [vmem:[#allocation2 + $0xe8] ss:$2 sm:$0x1] }
  0x52   : > { %v3752_v59 = vld [vmem:[#allocation4 + $0xa0] sm:$0xff]  ;;  %522 = vst.msk [vmem:[#allocation2 + $0x169] sm:$0xff] %vm447_vm1, %v443_v37  ;;  %v572_v53 = vld [vmem:[#allocation2 + $0x118] ss:$2 sm:$0x1]  ;;  %v1032_v56 = vld [vmem:[#allocation4 + $0x10] sm:$0xff] }
  0x53   : > { %v3758_v61 = vld [vmem:[#allocation4 + $0xc1] sm:$0xff]  ;;  %v751_v23 = vpack.c.bf16 %v3752_v59, %v3750_v58  ;;  %616 = vst.msk [vmem:[#allocation4 + $0x98] sm:$0x1] %vm456_vm2, %v564_v49  ;;  %v1033_v60 = vld [vmem:[#allocation4 + $0x30] sm:$0xff]  ;;  %620 = vst.msk [vmem:[#allocation4 + $0xb8] sm:$0x1] %vm456_vm2, %v572_v53  ;;  %v1348_v49 = vpack.c.bf16 %v3730_v47, %v3693_v31  ;;  %v1349_v31 = vpack.c.bf16 %v3750_v58, %v3737_v3 }
  0x54   : > { %v3765_v9 = vld [vmem:[#allocation4 + $0xe1] sm:$0xff]  ;;  %v1136_v25 = vld [vmem:[#allocation5 + $0x30] sm:$0xff]  ;;  %523 = vst.msk [vmem:[#allocation2 + $0x171] sm:$0xff] %vm447_vm1, %v444_v52  ;;  %v1040_v7 = vpack.c.bf16 %v1033_v60, %v1032_v56  ;;  %v1264_v33 = vsel %vm780_vm0, %v3789_v30, 0  ;;  %v2845_v41 = vld [vmem:[%s4258_s3 + $0xe] sm:$0x3] }
  0x55   : > { %v678_v11 = vld [vmem:[#allocation2 + $0x109] ss:$2 sm:$0xff]  ;;  %v940_v35 = vpack.c.bf16 %v3765_v9, %v3758_v61  ;;  %3020 = vmatmul.mubr.msk.bf16.vlgmr.msra.gmra.mxu1 %vm447_vm1, %v750_v13  ;;  %v1143_v48 = vpack.c.bf16 %v1136_v25, %v1135_v24  ;;  %v1137_v63 = vld [vmem:[#allocation5 + $0x50] sm:$0xff]  ;;  %1686 = vst.msk [vmem:[#allocation3] sm:$0xff] %vm1685_vm4, %v3323_v2  ;;  %1690 = vst.msk [vmem:[#allocation3 + $0x90] sm:$0xff] %vm1685_vm4, %v3323_v2 }
  0x56   : > { %727 = vst.msk [vmem:[#allocation5 + $0xb0] sm:$0xff] %vm447_vm1, %v678_v11  ;;  %v335_v22 = vld [vmem:[%s3535_s13 + $0xf0] sm:$0xff]  ;;  %3038 = vmatpush3.bf16.msra.mxu1 %v1059_v8  ;;  %3023 = vmatprep.mubr.msk.bf16.mxu1 %vm447_vm1, %v751_v23  ;;  %v1139_v8 = vld [vmem:[#allocation5 + $0x90] sm:$0xff]  ;;  %s296_s13 = sand.u32 1, %s3313_s28  }
  0x57   : > { %v374_v29 = vmul.f32 %v3526_v5, %v335_v22  ;;  %v3800_v46 = vld [vmem:[#allocation4 + $0xc0] sm:$0xff]  ;;  %3205 = vmatprep.subr.msk.bf16.mxu1 %vm780_vm0, %v3789_v30  ;;  %v414_v5 = vadd.f32 %v3540_v6, %v375_v50  ;;  %3034 = vmatmul.mubr.msk.bf16.gmra.mxu0 %vm447_vm1, %v940_v35  ;;  %v578_v11 = vld [vmem:[#allocation2 + $0x138] ss:$2 sm:$0xff]  ;;  %v686_v12 = vld [vmem:[#allocation2 + $0x139] ss:$2 sm:$0xff]  ;;  %v1367_v22 = vsel %vm780_vm0, %v3745_v54, 0 }
  0x58   : > { %v3806_v51 = vld [vmem:[#allocation4 + $0xe0] sm:$0xff]  ;;  %3049 = vmatprep.mubr.msk.bf16.mxu0 %vm447_vm1, %v1143_v48  ;;  %v1138_v0 = vld [vmem:[#allocation5 + $0x70] sm:$0xff]  ;;  %623 = vst.msk [vmem:[#allocation4 + $0xd0] sm:$0xff] %vm447_vm1, %v578_v11  ;;  %731 = vst.msk [vmem:[#allocation5 + $0xd0] sm:$0xff] %vm447_vm1, %v686_v12  ;;  %s2806_s17 = sshll.u32 %s296_s13, 6  ;;  %s4215_s9 = scalar_lea.sflag [#allocation7], %s296_s13 }
  0x59   : > { %v413_v4 = vadd.f32 %v3540_v6, %v374_v29  ;;  %v752_v62 = vpack.c.bf16 %v3806_v51, %v3800_v46  ;;  %v446_v1 = vmax.f32 %v414_v5, 0.0  ;;  %v1144_v6 = vpack.c.bf16 %v1138_v0, %v1137_v63  ;;  %v2850_v14 = vld [vmem:[%s4258_s3 + $0x10] sm:$0x3]  ;;  %v580_v17 = vld [vmem:[#allocation2 + $0x148] ss:$2 sm:$0x1] }
  0x5a   : > { %v1034_v18 = vld [vmem:[#allocation4 + $0x50] sm:$0xff]  ;;  %624 = vst.msk [vmem:[#allocation4 + $0xd8] sm:$0x1] %vm456_vm2, %v580_v17  ;;  %v1350_v5 = vpack.c.bf16 %v3800_v46, %v3752_v59  ;;  %v1553_v46 = vpack.c.bf16 %v3708_v38, %v3651_v57  ;;  %v1452_v57 = vpack.c.bf16 %v3671_v15, %v3682_v21  ;;  %s4185_s18 = scalar_lea.vmem [#allocation6], %s2806_s17 }
  0x5b   : > { %v445_v55 = vmax.f32 %v413_v4, 0.0  ;;  %525 = vst.msk [vmem:[#allocation2 + $0x189] sm:$0xff] %vm447_vm1, %v446_v1  ;;  %v1035_v19 = vld [vmem:[#allocation4 + $0x70] sm:$0xff]  ;;  %v586_v25 = vld [vmem:[#allocation2 + $0x168] ss:$2 sm:$0xff]  ;;  %v1470_v1 = vsel %vm780_vm0, %v2845_v41, 0 }
  0x5c   : > { %v1036_v23 = vld [vmem:[#allocation4 + $0x90] sm:$0xff]  ;;  %v694_v26 = vld [vmem:[#allocation2 + $0x169] ss:$2 sm:$0xff]  ;;  %627 = vst.msk [vmem:[#allocation4 + $0xf0] sm:$0xff] %vm447_vm1, %v586_v25  ;;  %v1041_v28 = vpack.c.bf16 %v1035_v19, %v1034_v18  ;;  %s2740_s20 = sshll.u32 %s4185_s18, 4  ;;  %s4207_s20 = int_to_ptr.vmem [resolvable:$true] %s2740_s20 }
  0x5d   : > { %524 = vst.msk [vmem:[#allocation2 + $0x181] sm:$0xff] %vm447_vm1, %v445_v55  ;;  %v1140_v10 = vld [vmem:[#allocation5 + $0xb0] sm:$0xff]  ;;  %3024 = vmatmul.mubr.msk.bf16.gmra.mxu1 %vm447_vm1, %v752_v62  ;;  %735 = vst.msk [vmem:[#allocation5 + $0xf0] sm:$0xff] %vm447_vm1, %v694_v26  ;;  %v588_v27 = vld [vmem:[#allocation2 + $0x178] ss:$2 sm:$0x1]  ;;  %p3268_p0 = scmp.lt.s32.totalorder %s4207_s20, %s3266_s26 }
  0x5e   : > { %v1145_v13 = vpack.c.bf16 %v1140_v10, %v1139_v8  ;;  %3039 = vmatprep.mubr.msk.bf16.mxu1 %vm447_vm1, %v1040_v7  ;;  %v1037_v24 = vld [vmem:[#allocation4 + $0xb0] sm:$0xff]  ;;  %628 = vst.msk [vmem:[#allocation4 + $0xf8] sm:$0x1] %vm456_vm2, %v588_v27  ;;  %v1572_v62 = vsel %vm780_vm0, %v2850_v14, 0  ;;  %v1451_v10 = vpack.c.bf16 %v3680_v20, %v3626_v34  ;;  %v1453_v34 = vpack.c.bf16 %v3704_v36, %v3673_v16  ;;  %s3261_s24 = scalar_lea.vmem %s4207_s20, 1024 }
  0x5f   : > { %3050 = vmatmul.mubr.msk.bf16.vlgmr.msra.gmra.mxu0 %vm447_vm1, %v1144_v6  ;;  %v1042_v54 = vpack.c.bf16 %v1037_v24, %v1036_v23  ;;  %v1141_v37 = vld [vmem:[#allocation5 + $0xd0] sm:$0xff]  ;;  %v1554_v6 = vpack.c.bf16 %v3718_v42, %v3710_v39  ;;  %1693 = vst.msk [vmem:[#allocation3] sm:$0x1] %vm1692_vm5, %v3323_v2  ;;  %1694 = vst.msk [vmem:[#allocation3 + $0x10] sm:$0x1] %vm1692_vm5, %v3323_v2  ;;  %p3262_p11 = scmp.ne.s32.totalorder %s4207_s20, %s3261_s24  ;;  %p3269_p1 = scmp.lt.s32.totalorder %s3267_s10, %s3261_s24 }
  0x60   : > { %3068 = vmatpush3.bf16.msra.mxu0 %v1367_v22  ;;  %3053 = vmatprep.mubr.msk.bf16.mxu0 %vm447_vm1, %v1145_v13  ;;  %v1038_v43 = vld [vmem:[#allocation4 + $0xd0] sm:$0xff]  ;;  %1695 = vst.msk [vmem:[#allocation3 + $0x20] sm:$0x1] %vm1692_vm5, %v3323_v2  ;;  %1696 = vst.msk [vmem:[#allocation3 + $0x30] sm:$0x1] %vm1692_vm5, %v3323_v2 }
  0x61   : > { %3208 = vmatprep.subr.msk.bf16.mxu0 %vm780_vm0, %v2850_v14  ;;  %v1237_v44 = vld [vmem:[#allocation4 + $0x11] sm:$0xff]  ;;  %1697 = vst.msk [vmem:[#allocation3 + $0x40] sm:$0x1] %vm1692_vm5, %v3323_v2  ;;  %1698 = vst.msk [vmem:[#allocation3 + $0x50] sm:$0x1] %vm1692_vm5, %v3323_v2  ;;  %p3263_p12 = pnand %p3262_p11, %p3410_p5  ;;  %p3270_p2 = por %p3269_p1, %p3268_p0 }
  0x62   : > { %v592_v35 = vld [vmem:[#allocation2 + $0x190] ss:$2 sm:$0x1]  ;;  %v1238_v48 = vld [vmem:[#allocation4 + $0x31] sm:$0xff]  ;;  %1699 = vst.msk [vmem:[#allocation3 + $0x60] sm:$0x1] %vm1692_vm5, %v3323_v2 }
  0x63   : > { %630 = vst.msk [vmem:[#allocation4 + $0x108] sm:$0x1] %vm456_vm2, %v592_v35  ;;  %v1039_v30 = vld [vmem:[#allocation4 + $0xf0] sm:$0xff]  ;;  %v1245_v53 = vpack.c.bf16 %v1238_v48, %v1237_v44  ;;  %p3264_p13 = pneg %p3263_p12 }
  0x64   : > { %v590_v29 = vld [vmem:[#allocation2 + $0x180] ss:$2 sm:$0xff]  ;;  %v698_v32 = vld [vmem:[#allocation2 + $0x181] ss:$2 sm:$0xff]  ;;  %v1043_v52 = vpack.c.bf16 %v1039_v30, %v1038_v43  ;;  %1700 = vst.msk [vmem:[#allocation3 + $0x70] sm:$0x1] %vm1692_vm5, %v3323_v2 }
  0x65   : > { %629 = vst.msk [vmem:[#allocation4 + $0x100] sm:$0xff] %vm447_vm1, %v590_v29  ;;  %737 = vst.msk [vmem:[#allocation5 + $0x100] sm:$0xff] %vm447_vm1, %v698_v32  ;;  %3040 = vmatmul.mubr.msk.bf16.vlgmr.msra.gmra.mxu1 %vm447_vm1, %v1041_v28  ;;  %v1142_v4 = vld [vmem:[#allocation5 + $0xf0] sm:$0xff]  ;;  %p3271_p3 = pnand %p3270_p2, %p3264_p13 }
  0x66   : > { %3058 = vmatpush3.bf16.msra.mxu1 %v1264_v33  ;;  %3043 = vmatprep.mubr.msk.bf16.mxu1 %vm447_vm1, %v1042_v54  ;;  %v3850_v50 = vpack.c.bf16 %v1142_v4, %v1141_v37  ;;  %v1239_v55 = vld [vmem:[#allocation4 + $0x51] sm:$0xff]  ;;  %1701 = vst.msk [vmem:[#allocation3 + $0x80] sm:$0x1] %vm1692_vm5, %v3323_v2  ;;  %1702 = vst.msk [vmem:[#allocation3 + $0x90] sm:$0x1] %vm1692_vm5, %v3323_v2 }
  0x67   : > { %3207 = vmatprep.subr.msk.bf16.mxu1 %vm780_vm0, %v2845_v41  ;;  %v1240_v56 = vld [vmem:[#allocation4 + $0x71] sm:$0xff]  ;;  %1704 = vst.msk [vmem:[#allocation3 + $0x19] sm:$0x1] %vm1692_vm5, %v3323_v2  ;;  %1705 = vst.msk [vmem:[#allocation3 + $0x29] sm:$0x1] %vm1692_vm5, %v3323_v2 }
  0x68   : > { %3054 = vmatmul.mubr.msk.bf16.gmra.mxu0 %vm447_vm1, %v3850_v50  ;;  %v1241_v47 = vld [vmem:[#allocation4 + $0x91] sm:$0xff]  ;;  %v1246_v63 = vpack.c.bf16 %v1240_v56, %v1239_v55  ;;  %1706 = vst.msk [vmem:[#allocation3 + $0x39] sm:$0x1] %vm1692_vm5, %v3323_v2  ;;  %1707 = vst.msk [vmem:[#allocation3 + $0x49] sm:$0x1] %vm1692_vm5, %v3323_v2 }
  0x69   : > { %3069 = vmatprep.mubr.msk.bf16.mxu0 %vm447_vm1, %v1348_v49  ;;  %v1242_v60 = vld [vmem:[#allocation4 + $0xb1] sm:$0xff]  ;;  %1708 = vst.msk [vmem:[#allocation3 + $0x59] sm:$0x1] %vm1692_vm5, %v3323_v2  ;;  %1709 = vst.msk [vmem:[#allocation3 + $0x69] sm:$0x1] %vm1692_vm5, %v3323_v2 }
  0x6a   : > { %v1247_v0 = vpack.c.bf16 %v1242_v60, %v1241_v47  ;;  %v1243_v3 = vld [vmem:[#allocation4 + $0xd1] sm:$0xff]  ;;  %1710 = vst.msk [vmem:[#allocation3 + $0x79] sm:$0x1] %vm1692_vm5, %v3323_v2  ;;  %1711 = vst.msk [vmem:[#allocation3 + $0x89] sm:$0x1] %vm1692_vm5, %v3323_v2 }
  0x6b   : > { %v1244_v58 = vld [vmem:[#allocation4 + $0xf1] sm:$0xff]  ;;  %1688 = vst.msk [vmem:[#allocation3 + $0x8] sm:$0x3] %vm1687_vm6, %v3323_v2  ;;  %1691 = vst.msk [vmem:[#allocation3 + $0x98] sm:$0x3] %vm1687_vm6, %v3323_v2 }
  0x6c   : > { %v1347_v7 = vld [vmem:[#allocation4 + $0x100] sm:$0xff]  ;;  %v1248_v8 = vpack.c.bf16 %v1244_v58, %v1243_v3  ;;  %1703 = vst.msk [vmem:[#allocation3 + $0x9] sm:$0x1] %vm1692_vm5, %v3323_v2  ;;  %1712 = vst.msk [vmem:[#allocation3 + $0x99] sm:$0x1] %vm1692_vm5, %v3323_v2 }
  0x6d   : > { %3044 = vmatmul.mubr.msk.bf16.gmra.mxu1 %vm447_vm1, %v1043_v52  ;;  %v1351_v59 = vpack.c.bf16 %v1347_v7, %v3806_v51  ;;  %v1555_v51 = vpack.c.bf16 %v3758_v61, %v3727_v45  ;;  %v1552_v20 = vld [vmem:[#allocation4 + $0x101] sm:$0xff]  ;;  %v2857_v15 = vld [vmem:[%s4261_s6 + $0x4] sm:$0xf]  ;;  %v1734_v21 = vld [vmem:[%s4261_s6] sm:$0xf] }
  0x6e   : > { %3059 = vmatprep.mubr.msk.bf16.mxu1 %vm447_vm1, %v1245_v53  ;;  %v1450_v38 = vld [vmem:[#allocation5 + $0x100] sm:$0xff]  ;;  %v1556_v39 = vpack.c.bf16 %v1552_v20, %v3765_v9  ;;  %v1763_v16 = vsel %vm1761_vm7, %v2857_v15, 0  ;;  %v1843_v36 = vsel %vm1761_vm7, %v1734_v21, 0  ;;  %v3953_v2 = vld [vmem:[%s4261_s6 + $0x8] sm:$0xf] }
  0x6f   : > { %v1454_v42 = vpack.c.bf16 %v1450_v38, %v3714_v40  ;;  %v3960_v40 = vld [vmem:[%s4261_s6 + $0xc] sm:$0xf] }
  0x70   : > { %3070 = vmatmul.mubr.msk.bf16.vlgmr.msra.gmra.mxu0 %vm447_vm1, %v1349_v31 }
  0x71   : > { %3088 = vmatpush3.bf16.msra.mxu0 %v1572_v62  ;;  %3073 = vmatprep.mubr.msk.bf16.mxu0 %vm447_vm1, %v1350_v5 }
  0x72   : > { %3210 = vmatprep.subr.msk.bf16.mxu0 %vm1761_vm7, %v1734_v21 }
  0x75   : > { %3060 = vmatmul.mubr.msk.bf16.vlgmr.msra.gmra.mxu1 %vm447_vm1, %v1246_v63 }
  0x76   : > { %3078 = vmatpush3.bf16.msra.mxu1 %v1470_v1  ;;  %3063 = vmatprep.mubr.msk.bf16.mxu1 %vm447_vm1, %v1247_v0 }
  0x77   : > { %3209 = vmatprep.subr.msk.bf16.mxu1 %vm1761_vm7, %v2857_v15 }
  0x78   : > { %3074 = vmatmul.mubr.msk.bf16.gmra.mxu0 %vm447_vm1, %v1351_v59 }
  0x79   : > { %3089 = vmatprep.mubr.msk.bf16.mxu0 %vm447_vm1, %v1553_v46 }
  0x7d   : > { %3064 = vmatmul.mubr.msk.bf16.gmra.mxu1 %vm447_vm1, %v1248_v8 }
  0x7e   : > { %3079 = vmatprep.mubr.msk.bf16.mxu1 %vm447_vm1, %v1451_v10 }
  0x80   : > { %3090 = vmatmul.mubr.msk.bf16.vlgmr.msra.gmra.mxu0 %vm447_vm1, %v1554_v6 }
  0x81   : > { %3093 = vmatprep.mubr.msk.bf16.mxu0 %vm447_vm1, %v1555_v51  ;;  %3108 = vmatpush3.bf16.msra.mxu0 %v1843_v36 }
  0x82   : > { %3212 = vmatprep.subr.msk.bf16.mxu0 %vm1761_vm7, %v3960_v40 }
  0x85   : > { %3080 = vmatmul.mubr.msk.bf16.vlgmr.msra.gmra.mxu1 %vm447_vm1, %v1452_v57 }
  0x86   : > { %3083 = vmatprep.mubr.msk.bf16.mxu1 %vm447_vm1, %v1453_v34  ;;  %3098 = vmatpush3.bf16.msra.mxu1 %v1763_v16 }
  0x87   : > { %3211 = vmatprep.subr.msk.bf16.mxu1 %vm1761_vm7, %v3953_v2 }
  0x88   : > { %3094 = vmatmul.mubr.msk.bf16.gmra.mxu0 %vm447_vm1, %v1556_v39 }
  0x8d   : > { %3084 = vmatmul.mubr.msk.bf16.gmra.mxu1 %vm447_vm1, %v1454_v42 }
 0x106   : > { %v3011_v45 = vpop.f32.mrf.mxu0 }
 0x108   : > { %v818_v61 = vpop.f32.mrf.mxu0 }
 0x10a   : > { %v3012_v9 = vpop.f32.mrf.mxu0 }
 0x10c   : > { %v821_v12 = vpop.f32.mrf.mxu0 }
 0x10d   : > { %v3015_v11 = vpop.f32.mrf.mxu1 }
 0x10f   : > { %v834_v13 = vpop.f32.mrf.mxu1  ;;  %v3031_v14 = vpop.f32.mrf.mxu0 }
 0x111   : > { %v3016_v17 = vpop.f32.mrf.mxu1  ;;  %v992_v18 = vpop.f32.mrf.mxu0 }
 0x113   : > { %v3964_v19 = vpop.f32.mrf.mxu1  ;;  %v3032_v22 = vpop.f32.mrf.mxu0 }
 0x115   : > { %v3021_v23 = vpop.f32.mrf.mxu1  ;;  %v995_v24 = vpop.f32.mrf.mxu0 }
 0x116   : > { %v907_v1 = vadd.f32 %v3021_v23, %v3011_v45 }
 0x117   : > { %v898_v25 = vpop.f32.mrf.mxu1  ;;  %v3035_v26 = vpop.f32.mrf.mxu0 }
 0x118   : > { %v899_v58 = vadd.f32 %v898_v25, %v818_v61  ;;  %v1025_v8 = vadd.f32 %v3031_v14, %v907_v1 }
 0x119   : > { %v3022_v27 = vpop.f32.mrf.mxu1  ;;  %v1008_v28 = vpop.f32.mrf.mxu0 }
 0x11a   : > { %v910_v10 = vadd.f32 %v3022_v27, %v3012_v9  ;;  %v1023_v57 = vadd.f32 %v992_v18, %v899_v58 }
 0x11b   : > { %v901_v54 = vpop.f32.mrf.mxu1  ;;  %v3036_v29 = vpop.f32.mrf.mxu0 }
 0x11c   : > { %v902_v34 = vadd.f32 %v901_v54, %v821_v12  ;;  %v1026_v42 = vadd.f32 %v3032_v22, %v910_v10 }
 0x11d   : > { %v3025_v32 = vpop.f32.mrf.mxu1  ;;  %v3966_v33 = vpop.f32.mrf.mxu0 }
 0x11e   : > { %v923_v21 = vadd.f32 %v3025_v32, %v3015_v11  ;;  %v1024_v61 = vadd.f32 %v995_v24, %v902_v34 }
 0x11f   : > { %v914_v35 = vpop.f32.mrf.mxu1  ;;  %v3051_v41 = vpop.f32.mrf.mxu0 }
 0x120   : > { %v915_v36 = vadd.f32 %v914_v35, %v834_v13  ;;  %v1029_v1 = vadd.f32 %v3035_v26, %v923_v21 }
 0x121   : > { %v3026_v37 = vpop.f32.mrf.mxu1  ;;  %v1198_v43 = vpop.f32.mrf.mxu0 }
 0x122   : > { %v926_v9 = vadd.f32 %v3026_v37, %v3016_v17  ;;  %v1027_v22 = vadd.f32 %v1008_v28, %v915_v36 }
 0x123   : > { %v917_v44 = vpop.f32.mrf.mxu1  ;;  %v3052_v30 = vpop.f32.mrf.mxu0 }
 0x124   : > { %v1030_v24 = vadd.f32 %v3036_v29, %v926_v9  ;;  %v3988_v29 = vld [vmem:[%s4259_s4] ss:$0 sm:$0xff] }
 0x125   : > { %v3041_v4 = vpop.f32.mrf.mxu1  ;;  %v1201_v48 = vpop.f32.mrf.mxu0 }
 0x126   : > { %v1128_v20 = vadd.f32 %v3041_v4, %v1025_v8 }
 0x127   : > { %v1095_v49 = vpop.f32.mrf.mxu1 }
 0x128   : > { %v3968_v53 = vpop.f32.mrf.mxu0  ;;  %v1126_v15 = vadd.f32 %v1095_v49, %v1023_v57  ;;  %v1231_v23 = vadd.f32 %v3051_v41, %v1128_v20  ;;  %v918_v49 = vadd.f32 %v917_v44, %v3964_v19 }
 0x129   : > { %v3042_v52 = vpop.f32.mrf.mxu1 }
 0x12a   : > { %v1214_v56 = vpop.f32.mrf.mxu0  ;;  %v1129_v25 = vadd.f32 %v3042_v52, %v1026_v42  ;;  %v1229_v18 = vadd.f32 %v1198_v43, %v1126_v15 }
 0x12b   : > { %v1098_v55 = vpop.f32.mrf.mxu1 }
 0x12c   : > { %v3970_v47 = vpop.f32.mrf.mxu0  ;;  %v1127_v12 = vadd.f32 %v1098_v55, %v1024_v61  ;;  %v1232_v11 = vadd.f32 %v3052_v30, %v1129_v25  ;;  %v1028_v55 = vadd.f32 %v3966_v33, %v918_v49 }
 0x12d   : > { %v3045_v31 = vpop.f32.mrf.mxu1 }
 0x12e   : > { %v3972_v5 = vpop.f32.mrf.mxu0  ;;  %v1132_v35 = vadd.f32 %v3045_v31, %v1029_v1  ;;  %v1230_v8 = vadd.f32 %v1201_v48, %v1127_v12 }
 0x12f   : > { %v1111_v60 = vpop.f32.mrf.mxu1 }
 0x130   : > { %v3071_v63 = vpop.f32.mrf.mxu0  ;;  %v1130_v41 = vadd.f32 %v1111_v60, %v1027_v22  ;;  %v1235_v44 = vadd.f32 %v3968_v53, %v1132_v35  ;;  %v3994_v53 = vld [vmem:[%s4260_s5] ss:$0 sm:$0xff] }
 0x131   : > { %v3046_v62 = vpop.f32.mrf.mxu1 }
 0x132   : > { %v1403_v7 = vpop.f32.mrf.mxu0  ;;  %v1233_v30 = vadd.f32 %v1214_v56, %v1130_v41 }
 0x133   : > { %v1114_v0 = vpop.f32.mrf.mxu1 }
 0x134   : > { %v3072_v59 = vpop.f32.mrf.mxu0 }
 0x135   : > { %v3061_v3 = vpop.f32.mrf.mxu1 }
 0x136   : > { %v1406_v6 = vpop.f32.mrf.mxu0  ;;  %v1333_v54 = vadd.f32 %v3061_v3, %v1231_v23  ;;  %v1133_v3 = vadd.f32 %v3046_v62, %v1030_v24 }
 0x137   : > { %v1300_v46 = vpop.f32.mrf.mxu1 }
 0x138   : > { %v3974_v38 = vpop.f32.mrf.mxu0  ;;  %v1331_v13 = vadd.f32 %v1300_v46, %v1229_v18  ;;  %v1436_v17 = vadd.f32 %v3071_v63, %v1333_v54  ;;  %v1131_v46 = vadd.f32 %v1114_v0, %v1028_v55  ;;  %v1236_v62 = vadd.f32 %v3970_v47, %v1133_v3 }
 0x139   : > { %v3062_v51 = vpop.f32.mrf.mxu1 }
 0x13a   : > { %v3976_v16 = vpop.f32.mrf.mxu0  ;;  %v1334_v37 = vadd.f32 %v3062_v51, %v1232_v11  ;;  %v1434_v26 = vadd.f32 %v1403_v7, %v1331_v13 }
 0x13b   : > { %v1303_v39 = vpop.f32.mrf.mxu1 }
 0x13c   : > { %v3978_v14 = vpop.f32.mrf.mxu0  ;;  %v1332_v28 = vadd.f32 %v1303_v39, %v1230_v8  ;;  %v1437_v31 = vadd.f32 %v3072_v59, %v1334_v37  ;;  %v1234_v59 = vadd.f32 %v3972_v5, %v1131_v46  ;;  %v1722_v46 = vld [vmem:[#allocation3] sm:$0xff] }
 0x13d   : > { %v3065_v45 = vpop.f32.mrf.mxu1 }
 0x13e   : > { %v3980_v4 = vpop.f32.mrf.mxu0  ;;  %v1337_v7 = vadd.f32 %v3065_v45, %v1235_v44  ;;  %v1435_v0 = vadd.f32 %v1406_v6, %v1332_v28 }
 0x13f   : > { %v1316_v27 = vpop.f32.mrf.mxu1 }
 0x140   : > { %v3091_v32 = vpop.f32.mrf.mxu0  ;;  %v1335_v51 = vadd.f32 %v1316_v27, %v1233_v30  ;;  %v1440_v23 = vadd.f32 %v3974_v38, %v1337_v7  ;;  %v1735_v30 = vld [vmem:[#allocation3 + $0x1] sm:$0xff] }
 0x141   : > { %v3066_v58 = vpop.f32.mrf.mxu1 }
 0x142   : > { %v1608_v43 = vpop.f32.mrf.mxu0  ;;  %v1338_v15 = vadd.f32 %v3066_v58, %v1236_v62  ;;  %v1438_v25 = vadd.f32 %v3976_v16, %v1335_v51 }
 0x143   : > { %v1319_v52 = vpop.f32.mrf.mxu1 }
 0x144   : > { %v3092_v19 = vpop.f32.mrf.mxu0  ;;  %v1336_v6 = vadd.f32 %v1319_v52, %v1234_v59  ;;  %v1441_v1 = vadd.f32 %v3978_v14, %v1338_v15  ;;  %v1937_v59 = vsel %vm1761_vm7, %v3953_v2, 0  ;;  %v2039_v15 = vsel %vm1761_vm7, %v3960_v40, 0 }
 0x145   : > { %v3081_v10 = vpop.f32.mrf.mxu1 }
 0x146   : > { %v1539_v57 = vadd.f32 %v3081_v10, %v1436_v17  ;;  %v1611_v33 = vpop.f32.mrf.mxu0  ;;  %v1439_v13 = vadd.f32 %v3980_v4, %v1336_v6  ;;  %v1910_v6 = vld [vmem:[#allocation3 + $0x2] sm:$0xff] }
 0x147   : > { %v1506_v48 = vpop.f32.mrf.mxu1 }
 0x148   : > { %v1641_v60 = vadd.f32 %v3091_v32, %v1539_v57  ;;  %v1537_v63 = vadd.f32 %v1506_v48, %v1434_v26  ;;  %v3095_v42 = vpop.f32.mrf.mxu0 }
 0x149   : > { %v3082_v56 = vpop.f32.mrf.mxu1 }
 0x14a   : > { %v1656_v34 = vmul.f32 %v3988_v29, %v1641_v60  ;;  %v1639_v20 = vadd.f32 %v1608_v43, %v1537_v63  ;;  %v1540_v39 = vadd.f32 %v3082_v56, %v1437_v31  ;;  %v1624_v27 = vpop.f32.mrf.mxu0 }
 0x14b   : > { %v1509_v21 = vpop.f32.mrf.mxu1 }
 0x14c   : > { %v1671_v47 = vadd.f32 %v3994_v53, %v1656_v34  ;;  %v1654_v36 = vmul.f32 %v3988_v29, %v1639_v20  ;;  %v1642_v45 = vadd.f32 %v3092_v19, %v1540_v39  ;;  %v1538_v61 = vadd.f32 %v1509_v21, %v1435_v0  ;;  %v3096_v35 = vpop.f32.mrf.mxu0  ;;  %v2876_v21 = vld [vmem:[%s4261_s6 + $0x10] sm:$0xf] }
 0x14d   : > { %v3085_v9 = vpop.f32.mrf.mxu1 }
 0x14e   : > { %v1679_v18 = vmax.f32 %v1671_v47, 0.0  ;;  %v1669_v12 = vadd.f32 %v3994_v53, %v1654_v36  ;;  %v1657_v5 = vmul.f32 %v3988_v29, %v1642_v45  ;;  %v1640_v54 = vadd.f32 %v1611_v33, %v1538_v61  ;;  %v1627_v26 = vpop.f32.mrf.mxu0  ;;  %v2881_v47 = vld [vmem:[%s4261_s6 + $0x14] sm:$0xf] }
 0x14f   : > { %v1543_v22 = vadd.f32 %v3085_v9, %v1440_v23  ;;  %v1522_v49 = vpop.f32.mrf.mxu1 }
 0x150   : > { %1716 = vst.msk [vmem:[#allocation3 + $0x31] sm:$0xff] %vm1685_vm4, %v1679_v18  ;;  %v1677_v58 = vmax.f32 %v1669_v12, 0.0  ;;  %v1672_v38 = vadd.f32 %v3994_v53, %v1657_v5  ;;  %v1655_v16 = vmul.f32 %v3988_v29, %v1640_v54  ;;  %v1541_v11 = vadd.f32 %v1522_v49, %v1438_v25 }
 0x151   : > { %v1645_v32 = vadd.f32 %v3095_v42, %v1543_v22  ;;  %v3086_v24 = vpop.f32.mrf.mxu1 }
 0x152   : > { %1714 = vst.msk [vmem:[#allocation3 + $0x11] sm:$0xff] %vm1685_vm4, %v1677_v58  ;;  %v1680_v41 = vmax.f32 %v1672_v38, 0.0  ;;  %v1670_v14 = vadd.f32 %v3994_v53, %v1655_v16  ;;  %v1643_v52 = vadd.f32 %v1624_v27, %v1541_v11  ;;  %v1544_v8 = vadd.f32 %v3086_v24, %v1441_v1 }
 0x153   : > { %v1660_v17 = vmul.f32 %v3988_v29, %v1645_v32  ;;  %v1525_v37 = vpop.f32.mrf.mxu1 }
 0x154   : > { %1717 = vst.msk [vmem:[#allocation3 + $0x41] sm:$0xff] %vm1685_vm4, %v1680_v41  ;;  %v1678_v43 = vmax.f32 %v1670_v14, 0.0  ;;  %v1658_v55 = vmul.f32 %v3988_v29, %v1643_v52  ;;  %v1646_v3 = vadd.f32 %v3096_v35, %v1544_v8  ;;  %v1542_v4 = vadd.f32 %v1525_v37, %v1439_v13  ;;  %v2886_v14 = vld [vmem:[%s4261_s6 + $0x18] sm:$0xf]  ;;  %v2891_v52 = vld [vmem:[%s4261_s6 + $0x1c] sm:$0xf] }
 0x155   : > { %v1675_v10 = vadd.f32 %v3994_v53, %v1660_v17  ;;  %v2141_v13 = vsel %vm1761_vm7, %v2876_v21, 0  ;;  %v2243_v35 = vsel %vm1761_vm7, %v2881_v47, 0 }
 0x156   : > { %1715 = vst.msk [vmem:[#allocation3 + $0x21] sm:$0xff] %vm1685_vm4, %v1678_v43  ;;  %v1673_v28 = vadd.f32 %v3994_v53, %v1658_v55  ;;  %v1661_v57 = vmul.f32 %v3988_v29, %v1646_v3  ;;  %v1644_v19 = vadd.f32 %v1627_v26, %v1542_v4 }
 0x157   : > { %v1683_v44 = vmax.f32 %v1675_v10, 0.0  ;;  %v1725_v39 = vld [vmem:[#allocation3 + $0x30] sm:$0xff] }
 0x158   : > { %v1681_v48 = vmax.f32 %v1673_v28, 0.0  ;;  %v1676_v31 = vadd.f32 %v3994_v53, %v1661_v57  ;;  %v1659_v60 = vmul.f32 %v3988_v29, %v1644_v19  ;;  %v4029_v29 = vld [vmem:[#allocation3 + $0x31] sm:$0xff]  ;;  %v2346_v28 = vsel %vm1761_vm7, %v2886_v14, 0 }
 0x159   : > { %1720 = vst.msk [vmem:[#allocation3 + $0x71] sm:$0xff] %vm1685_vm4, %v1683_v44  ;;  %v4021_v63 = vld [vmem:[#allocation3 + $0x11] sm:$0xff]  ;;  %v2448_v19 = vsel %vm1761_vm7, %v2891_v52, 0 }
 0x15a   : > { %v1723_v33 = vld [vmem:[#allocation3 + $0x10] sm:$0xff]  ;;  %1718 = vst.msk [vmem:[#allocation3 + $0x51] sm:$0xff] %vm1685_vm4, %v1681_v48  ;;  %v1684_v62 = vmax.f32 %v1676_v31, 0.0  ;;  %v1674_v7 = vadd.f32 %v3994_v53, %v1659_v60  ;;  %v1743_v51 = vpack.c.bf16 %v4021_v63, %v1735_v30 }
 0x15b   : > { %v1730_v56 = vpack.c.bf16 %v1723_v33, %v1722_v46  ;;  %v4054_v36 = vld [vmem:[#allocation3 + $0x41] sm:$0xff]  ;;  %v1911_v9 = vld [vmem:[#allocation3 + $0x12] sm:$0xff]  ;;  %v2637_v46 = vld [vmem:[%s4262_s7] sm:$0x3] }
 0x15c   : > { %1721 = vst.msk [vmem:[#allocation3 + $0x81] sm:$0xff] %vm1685_vm4, %v1684_v62  ;;  %v1682_v0 = vmax.f32 %v1674_v7, 0.0  ;;  %3099 = vmatprep.mubr.msk.bf16.mxu1 %vm1685_vm4, %v1743_v51  ;;  %v1726_v40 = vld [vmem:[#allocation3 + $0x40] sm:$0xff]  ;;  %v1918_v1 = vpack.c.bf16 %v1911_v9, %v1910_v6  ;;  %v1913_v38 = vld [vmem:[#allocation3 + $0x32] sm:$0xff]  ;;  %v2123_v10 = vpack.c.bf16 %v4054_v36, %v4029_v29  ;;  %v2651_v62 = vsel %vm780_vm0, %v2637_v46, 0 }
 0x15d   : > { %3109 = vmatprep.mubr.msk.bf16.mxu0 %vm1685_vm4, %v1730_v56  ;;  %v4031_v34 = vld [vmem:[#allocation3 + $0x21] sm:$0xff]  ;;  %v2021_v11 = vpack.c.bf16 %v1726_v40, %v1725_v39  ;;  %v2896_v30 = vld [vmem:[%s4261_s6 + $0x20] sm:$0xf] }
 0x15e   : > { %v1724_v20 = vld [vmem:[#allocation3 + $0x20] sm:$0xff]  ;;  %1719 = vst.msk [vmem:[#allocation3 + $0x61] sm:$0xff] %vm1685_vm4, %v1682_v0  ;;  %v4036_v53 = vpack.c.bf16 %v4029_v29, %v4031_v34  ;;  %v2122_v3 = vpack.c.bf16 %v4031_v34, %v4021_v63  ;;  %v2625_v7 = vld [vmem:[#allocation5 + $0x10] sm:$0xff] }
 0x15f   : > { %v4038_v42 = vpack.c.bf16 %v1725_v39, %v1724_v20  ;;  %v2020_v22 = vpack.c.bf16 %v1724_v20, %v1723_v33  ;;  %v1912_v49 = vld [vmem:[#allocation3 + $0x22] sm:$0xff]  ;;  %v2550_v33 = vsel %vm1761_vm7, %v2896_v30, 0  ;;  %v2626_v51 = vld [vmem:[#allocation5 + $0x30] sm:$0xff] }
 0x160   : > { %3100 = vmatmul.mubr.msk.bf16.vlgmr.msra.gmra.mxu1 %vm1685_vm4, %v4036_v53  ;;  %v4070_v25 = vld [vmem:[#allocation3 + $0x71] sm:$0xff]  ;;  %v4083_v16 = vpack.c.bf16 %v1913_v38, %v1912_v49  ;;  %v1914_v32 = vld [vmem:[#allocation3 + $0x42] sm:$0xff]  ;;  %v2224_v4 = vpack.c.bf16 %v1912_v49, %v1911_v9  ;;  %v2633_v29 = vpack.c.bf16 %v2626_v51, %v2625_v7 }
 0x161   : > { %3110 = vmatmul.mubr.msk.bf16.vlgmr.msra.gmra.mxu0 %vm1685_vm4, %v4038_v42  ;;  %3118 = vmatpush3.bf16.msra.mxu1 %v1937_v59  ;;  %v4056_v2 = vld [vmem:[#allocation3 + $0x51] sm:$0xff]  ;;  %v2225_v26 = vpack.c.bf16 %v1914_v32, %v1913_v38 }
 0x162   : > { %3128 = vmatpush3.bf16.msra.mxu0 %v2039_v15  ;;  %v1727_v45 = vld [vmem:[#allocation3 + $0x50] sm:$0xff]  ;;  %v4060_v61 = vpack.c.bf16 %v4056_v2, %v4054_v36  ;;  %3213 = vmatprep.subr.msk.bf16.mxu1 %vm1761_vm7, %v2876_v21 }
 0x163   : > { %v4062_v23 = vpack.c.bf16 %v1727_v45, %v1726_v40  ;;  %3214 = vmatprep.subr.msk.bf16.mxu0 %vm1761_vm7, %v2881_v47  ;;  %v1729_v12 = vld [vmem:[#allocation3 + $0x70] sm:$0xff]  ;;  %v2019_v17 = vld [vmem:[#allocation3 + $0x80] sm:$0xff] }
 0x164   : > { %3103 = vmatprep.mubr.msk.bf16.mxu1 %vm1685_vm4, %v4060_v61  ;;  %v1915_v58 = vld [vmem:[#allocation3 + $0x52] sm:$0xff]  ;;  %v2023_v55 = vpack.c.bf16 %v2019_v17, %v1729_v12  ;;  %v2121_v48 = vld [vmem:[#allocation3 + $0x81] sm:$0xff] }
 0x165   : > { %3113 = vmatprep.mubr.msk.bf16.mxu0 %vm1685_vm4, %v4062_v23  ;;  %v1741_v27 = vld [vmem:[#allocation3 + $0x61] sm:$0xff]  ;;  %v4086_v24 = vpack.c.bf16 %v1915_v58, %v1914_v32  ;;  %v1917_v37 = vld [vmem:[#allocation3 + $0x72] sm:$0xff]  ;;  %v2125_v60 = vpack.c.bf16 %v2121_v48, %v4070_v25 }
 0x166   : > { %v1728_v18 = vld [vmem:[#allocation3 + $0x60] sm:$0xff]  ;;  %v4073_v5 = vpack.c.bf16 %v4070_v25, %v1741_v27  ;;  %v2124_v57 = vpack.c.bf16 %v1741_v27, %v4056_v2  ;;  %v2326_v56 = vld [vmem:[#allocation3 + $0x90] sm:$0xff] }
 0x167   : > { %v4075_v54 = vpack.c.bf16 %v1729_v12, %v1728_v18  ;;  %v2022_v41 = vpack.c.bf16 %v1728_v18, %v1727_v45  ;;  %v1916_v8 = vld [vmem:[#allocation3 + $0x62] sm:$0xff]  ;;  %v2428_v0 = vld [vmem:[#allocation3 + $0x91] sm:$0xff]  ;;  %v2330_v34 = vpack.c.bf16 %v2326_v56, %v2019_v17 }
 0x168   : > { %3104 = vmatmul.mubr.msk.bf16.gmra.mxu1 %vm1685_vm4, %v4073_v5  ;;  %v1921_v43 = vpack.c.bf16 %v1917_v37, %v1916_v8  ;;  %v2226_v44 = vpack.c.bf16 %v1916_v8, %v1915_v58  ;;  %v2223_v31 = vld [vmem:[#allocation3 + $0x82] sm:$0xff]  ;;  %v2432_v20 = vpack.c.bf16 %v2428_v0, %v2121_v48  ;;  %v2627_v39 = vld [vmem:[#allocation5 + $0x50] sm:$0xff] }
 0x169   : > { %3114 = vmatmul.mubr.msk.bf16.gmra.mxu0 %vm1685_vm4, %v4075_v54  ;;  %3119 = vmatprep.mubr.msk.bf16.mxu1 %vm1685_vm4, %v1918_v1  ;;  %v2227_v63 = vpack.c.bf16 %v2223_v31, %v1917_v37  ;;  %v2630_v59 = vld [vmem:[#allocation5 + $0xb0] sm:$0xff] }
 0x16a   : > { %3129 = vmatprep.mubr.msk.bf16.mxu0 %vm1685_vm4, %v2020_v22  ;;  %v2530_v47 = vld [vmem:[#allocation3 + $0x92] sm:$0xff] }
 0x16b   : > { %v2534_v36 = vpack.c.bf16 %v2530_v47, %v2223_v31 }
 0x170   : > { %3120 = vmatmul.mubr.msk.bf16.vlgmr.msra.gmra.mxu1 %vm1685_vm4, %v4083_v16 }
 0x171   : > { %3130 = vmatmul.mubr.msk.bf16.vlgmr.msra.gmra.mxu0 %vm1685_vm4, %v2021_v11  ;;  %3138 = vmatpush3.bf16.msra.mxu1 %v2141_v13 }
 0x172   : > { %3123 = vmatprep.mubr.msk.bf16.mxu1 %vm1685_vm4, %v4086_v24  ;;  %3133 = vmatprep.mubr.msk.bf16.mxu0 %vm1685_vm4, %v2022_v41 }
 0x173   : > { %3148 = vmatpush3.bf16.msra.mxu0 %v2243_v35  ;;  %3215 = vmatprep.subr.msk.bf16.mxu1 %vm1761_vm7, %v2886_v14 }
 0x174   : > { %3216 = vmatprep.subr.msk.bf16.mxu0 %vm1761_vm7, %v2891_v52 }
 0x178   : > { %3124 = vmatmul.mubr.msk.bf16.gmra.mxu1 %vm1685_vm4, %v1921_v43 }
 0x179   : > { %3134 = vmatmul.mubr.msk.bf16.gmra.mxu0 %vm1685_vm4, %v2023_v55  ;;  %3139 = vmatprep.mubr.msk.bf16.mxu1 %vm1685_vm4, %v2122_v3 }
 0x17a   : > { %3149 = vmatprep.mubr.msk.bf16.mxu0 %vm1685_vm4, %v2224_v4 }
 0x180   : > { %3140 = vmatmul.mubr.msk.bf16.vlgmr.msra.gmra.mxu1 %vm1685_vm4, %v2123_v10 }
 0x181   : > { %3150 = vmatmul.mubr.msk.bf16.vlgmr.msra.gmra.mxu0 %vm1685_vm4, %v2225_v26  ;;  %3158 = vmatpush3.bf16.msra.mxu1 %v2346_v28 }
 0x182   : > { %3143 = vmatprep.mubr.msk.bf16.mxu1 %vm1685_vm4, %v2124_v57  ;;  %3153 = vmatprep.mubr.msk.bf16.mxu0 %vm1685_vm4, %v2226_v44 }
 0x183   : > { %3168 = vmatpush3.bf16.msra.mxu0 %v2448_v19  ;;  %3217 = vmatprep.subr.msk.bf16.mxu1 %vm1761_vm7, %v2896_v30 }
 0x184   : > { %3218 = vmatprep.subr.msk.bf16.mxu0 %vm780_vm0, %v2637_v46 }
 0x188   : > { %3144 = vmatmul.mubr.msk.bf16.gmra.mxu1 %vm1685_vm4, %v2125_v60 }
 0x189   : > { %3154 = vmatmul.mubr.msk.bf16.gmra.mxu0 %vm1685_vm4, %v2227_v63  ;;  %3159 = vmatprep.mubr.msk.bf16.mxu1 %vm1685_vm4, %v4038_v42  ;;  %v2629_v42 = vld [vmem:[#allocation5 + $0x90] sm:$0xff] }
 0x18a   : > { %3169 = vmatprep.mubr.msk.bf16.mxu0 %vm1685_vm4, %v4036_v53  ;;  %v2628_v53 = vld [vmem:[#allocation5 + $0x70] sm:$0xff]  ;;  %v2635_v21 = vpack.c.bf16 %v2630_v59, %v2629_v42 }
 0x18b   : > { %v2634_v15 = vpack.c.bf16 %v2628_v53, %v2627_v39 }
 0x190   : > { %3160 = vmatmul.mubr.msk.bf16.vlgmr.msra.gmra.mxu1 %vm1685_vm4, %v4062_v23 }
 0x191   : > { %3170 = vmatmul.mubr.msk.bf16.vlgmr.msra.gmra.mxu0 %vm1685_vm4, %v4060_v61  ;;  %3178 = vmatpush3.bf16.msra.mxu1 %v2550_v33 }
 0x192   : > { %3163 = vmatprep.mubr.msk.bf16.mxu1 %vm1685_vm4, %v4075_v54  ;;  %3173 = vmatprep.mubr.msk.bf16.mxu0 %vm1685_vm4, %v4073_v5 }
 0x193   : > { %3188 = vmatpush3.bf16.msra.mxu0 %v2651_v62 }
 0x198   : > { %3164 = vmatmul.mubr.msk.bf16.gmra.mxu1 %vm1685_vm4, %v2330_v34 }
 0x199   : > { %3174 = vmatmul.mubr.msk.bf16.gmra.mxu0 %vm1685_vm4, %v2432_v20  ;;  %3179 = vmatprep.mubr.msk.bf16.mxu1 %vm1685_vm4, %v4083_v16 }
 0x19a   : > { %3189 = vmatprep.mubr.msk.bf16.mxu0 %vm447_vm1, %v2633_v29 }
 0x1a0   : > { %3180 = vmatmul.mubr.msk.bf16.vlgmr.msra.gmra.mxu1 %vm1685_vm4, %v4086_v24 }
 0x1a1   : > { %3190 = vmatmul.mubr.msk.bf16.vlgmr.msra.gmra.mxu0 %vm447_vm1, %v2634_v15  ;;  %3183 = vmatprep.mubr.msk.bf16.mxu1 %vm1685_vm4, %v1921_v43 }
 0x1a2   : > { %3193 = vmatprep.mubr.msk.bf16.mxu0 %vm447_vm1, %v2635_v21 }
 0x1a8   : > { %3184 = vmatmul.mubr.msk.bf16.gmra.mxu1 %vm1685_vm4, %v2534_v36 }
 0x1a9   : > { %3194 = vmatmul.mubr.msk.bf16.gmra.mxu0 %vm447_vm1, %v3850_v50 }
 0x220   : > { %v3101_v2 = vpop.f32.mrf.mxu1 }
 0x221   : > { %v3111_v40 = vpop.f32.mrf.mxu0 }
 0x222   : > { %v1799_v45 = vpop.f32.mrf.mxu1  ;;  %v1888_v63 = vadd.f32 %v3111_v40, %v3101_v2 }
 0x223   : > { %v1879_v61 = vpop.f32.mrf.mxu0 }
 0x224   : > { %v3102_v23 = vpop.f32.mrf.mxu1  ;;  %v1880_v7 = vadd.f32 %v1879_v61, %v1799_v45 }
 0x225   : > { %v3112_v25 = vpop.f32.mrf.mxu0 }
 0x226   : > { %v1802_v6 = vpop.f32.mrf.mxu1  ;;  %v1891_v29 = vadd.f32 %v3112_v25, %v3102_v23 }
 0x227   : > { %v1882_v9 = vpop.f32.mrf.mxu0 }
 0x228   : > { %v3105_v27 = vpop.f32.mrf.mxu1  ;;  %v1883_v53 = vadd.f32 %v1882_v9, %v1802_v6 }
 0x229   : > { %v3115_v18 = vpop.f32.mrf.mxu0 }
 0x22a   : > { %v1815_v12 = vpop.f32.mrf.mxu1  ;;  %v1904_v47 = vadd.f32 %v3115_v18, %v3105_v27 }
 0x22b   : > { %v1895_v5 = vpop.f32.mrf.mxu0 }
 0x22c   : > { %v3106_v54 = vpop.f32.mrf.mxu1 }
 0x22d   : > { %v3116_v1 = vpop.f32.mrf.mxu0 }
 0x22e   : > { %v4156_v22 = vpop.f32.mrf.mxu1 }
 0x22f   : > { %v4158_v49 = vpop.f32.mrf.mxu0 }
 0x230   : > { %v3121_v58 = vpop.f32.mrf.mxu1  ;;  %v1899_v27 = vadd.f32 %v4158_v49, %v4156_v22 }
 0x231   : > { %v3131_v50 = vpop.f32.mrf.mxu0  ;;  %v2006_v51 = vadd.f32 %v3121_v58, %v1888_v63  ;;  %v1907_v63 = vadd.f32 %v3116_v1, %v3106_v54 }
 0x232   : > { %v1973_v38 = vpop.f32.mrf.mxu1 }
 0x233   : > { %v2075_v16 = vpop.f32.mrf.mxu0  ;;  %v2004_v34 = vadd.f32 %v1973_v38, %v1880_v7  ;;  %v2108_v42 = vadd.f32 %v3131_v50, %v2006_v51 }
 0x234   : > { %v3122_v11 = vpop.f32.mrf.mxu1 }
 0x235   : > { %v3132_v13 = vpop.f32.mrf.mxu0  ;;  %v2007_v59 = vadd.f32 %v3122_v11, %v1891_v29  ;;  %v2106_v36 = vadd.f32 %v2075_v16, %v2004_v34 }
 0x236   : > { %v1976_v32 = vpop.f32.mrf.mxu1 }
 0x237   : > { %v2078_v24 = vpop.f32.mrf.mxu0  ;;  %v2005_v2 = vadd.f32 %v1976_v32, %v1883_v53  ;;  %v2109_v45 = vadd.f32 %v3132_v13, %v2007_v59 }
 0x238   : > { %v3125_v35 = vpop.f32.mrf.mxu1 }
 0x239   : > { %v3135_v41 = vpop.f32.mrf.mxu0  ;;  %v2010_v61 = vadd.f32 %v3125_v35, %v1904_v47  ;;  %v2107_v6 = vadd.f32 %v2078_v24, %v2005_v2 }
 0x23a   : > { %v1989_v14 = vpop.f32.mrf.mxu1 }
 0x23b   : > { %v2091_v52 = vpop.f32.mrf.mxu0 }
 0x23c   : > { %v3126_v8 = vpop.f32.mrf.mxu1 }
 0x23d   : > { %v4160_v17 = vpop.f32.mrf.mxu0  ;;  %v2011_v18 = vadd.f32 %v3126_v8, %v1907_v63 }
 0x23e   : > { %v1992_v37 = vpop.f32.mrf.mxu1 }
 0x23f   : > { %v4162_v43 = vpop.f32.mrf.mxu0  ;;  %v2009_v54 = vadd.f32 %v1992_v37, %v1899_v27 }
 0x240   : > { %v3141_v55 = vpop.f32.mrf.mxu1 }
 0x241   : > { %v3151_v3 = vpop.f32.mrf.mxu0  ;;  %v2210_v40 = vadd.f32 %v3141_v55, %v2108_v42 }
 0x242   : > { %v2177_v4 = vpop.f32.mrf.mxu1 }
 0x243   : > { %v2279_v10 = vpop.f32.mrf.mxu0  ;;  %v2208_v58 = vadd.f32 %v2177_v4, %v2106_v36  ;;  %v2312_v9 = vadd.f32 %v3151_v3, %v2210_v40  ;;  %v2113_v4 = vadd.f32 %v4160_v17, %v2011_v18 }
 0x244   : > { %v3142_v26 = vpop.f32.mrf.mxu1 }
 0x245   : > { %v3152_v28 = vpop.f32.mrf.mxu0  ;;  %v2211_v50 = vadd.f32 %v3142_v26, %v2109_v45 }
 0x246   : > { %v2180_v57 = vpop.f32.mrf.mxu1 }
 0x247   : > { %v2282_v19 = vpop.f32.mrf.mxu0  ;;  %v2209_v32 = vadd.f32 %v2180_v57, %v2107_v6  ;;  %v2313_v55 = vadd.f32 %v3152_v28, %v2211_v50 }
 0x248   : > { %v3145_v44 = vpop.f32.mrf.mxu1 }
 0x249   : > { %v4164_v30 = vpop.f32.mrf.mxu0  ;;  %v2311_v8 = vadd.f32 %v2282_v19, %v2209_v32 }
 0x24a   : > { %v2193_v46 = vpop.f32.mrf.mxu1 }
 0x24b   : > { %v4166_v48 = vpop.f32.mrf.mxu0 }
 0x24c   : > { %v3146_v31 = vpop.f32.mrf.mxu1 }
 0x24d   : > { %v4168_v60 = vpop.f32.mrf.mxu0 }
 0x24e   : > { %4266 = vst [vmem:[#allocation9_spill] sm:$0xff] %v4168_v60  ;;  %v4170_v33 = vpop.f32.mrf.mxu1  ;;  %v1896_v60 = vadd.f32 %v1895_v5, %v1815_v12  ;;  %v2112_v12 = vadd.f32 %v3135_v41, %v2010_v61  ;;  %v2310_v5 = vadd.f32 %v2279_v10, %v2208_v58  ;;  %v2111_v10 = vadd.f32 %v4162_v43, %v2009_v54 }
 0x24f   : > { %4267 = vst [vmem:[#allocation10_spill] sm:$0xff] %v4170_v33  ;;  %v4172_v62 = vpop.f32.mrf.mxu0 }
 0x250   : > { %4268 = vst [vmem:[#allocation11_spill] sm:$0xff] %v4172_v62  ;;  %v3161_v56 = vpop.f32.mrf.mxu1  ;;  %v2008_v23 = vadd.f32 %v1989_v14, %v1896_v60  ;;  %v2214_v24 = vadd.f32 %v3145_v44, %v2112_v12 }
 0x251   : > { %v3171_v0 = vpop.f32.mrf.mxu0  ;;  %v2415_v13 = vadd.f32 %v3161_v56, %v2312_v9 }
 0x252   : > { %v2382_v20 = vpop.f32.mrf.mxu1  ;;  %v2110_v35 = vadd.f32 %v2091_v52, %v2008_v23  ;;  %v2215_v52 = vadd.f32 %v3146_v31, %v2113_v4  ;;  %v2316_v7 = vadd.f32 %v4164_v30, %v2214_v24 }
 0x253   : > { %v2484_v39 = vpop.f32.mrf.mxu0  ;;  %v2413_v3 = vadd.f32 %v2382_v20, %v2310_v5  ;;  %v2517_v60 = vadd.f32 %v3171_v0, %v2415_v13 }
 0x254   : > { %v3162_v15 = vpop.f32.mrf.mxu1  ;;  %v2212_v26 = vadd.f32 %v2193_v46, %v2110_v35 }
 0x255   : > { %v3172_v21 = vpop.f32.mrf.mxu0  ;;  %v2416_v41 = vadd.f32 %v3162_v15, %v2313_v55  ;;  %v2515_v28 = vadd.f32 %v2484_v39, %v2413_v3  ;;  %v4270_v42 = vld [vmem:[#allocation9_spill] sm:$0xff] }
 0x256   : > { %v2385_v33 = vpop.f32.mrf.mxu1  ;;  %v2314_v17 = vadd.f32 %v4166_v48, %v2212_v26  ;;  %v4269_v46 = vld [vmem:[#allocation10_spill] sm:$0xff]  ;;  %v2317_v43 = vadd.f32 %v4270_v42, %v2215_v52 }
 0x257   : > { %v2487_v62 = vpop.f32.mrf.mxu0  ;;  %v2414_v44 = vadd.f32 %v2385_v33, %v2311_v8  ;;  %v2213_v56 = vadd.f32 %v4269_v46, %v2111_v10  ;;  %v2518_v0 = vadd.f32 %v3172_v21, %v2416_v41  ;;  %v4271_v33 = vld [vmem:[#allocation11_spill] sm:$0xff] }
 0x258   : > { %v3165_v25 = vpop.f32.mrf.mxu1 }
 0x259   : > { %v3175_v38 = vpop.f32.mrf.mxu0  ;;  %v2419_v34 = vadd.f32 %v3165_v25, %v2316_v7  ;;  %v2516_v15 = vadd.f32 %v2487_v62, %v2414_v44  ;;  %v2315_v39 = vadd.f32 %v4271_v33, %v2213_v56 }
 0x25a   : > { %v2398_v16 = vpop.f32.mrf.mxu1 }
 0x25b   : > { %v2500_v11 = vpop.f32.mrf.mxu0  ;;  %v2417_v47 = vadd.f32 %v2398_v16, %v2314_v17  ;;  %v2521_v2 = vadd.f32 %v3175_v38, %v2419_v34 }
 0x25c   : > { %v3166_v1 = vpop.f32.mrf.mxu1 }
 0x25d   : > { %v3176_v14 = vpop.f32.mrf.mxu0  ;;  %v2420_v40 = vadd.f32 %v3166_v1, %v2317_v43  ;;  %v2519_v63 = vadd.f32 %v2500_v11, %v2417_v47 }
 0x25e   : > { %v2401_v22 = vpop.f32.mrf.mxu1 }
 0x25f   : > { %v2503_v49 = vpop.f32.mrf.mxu0  ;;  %v2418_v23 = vadd.f32 %v2401_v22, %v2315_v39  ;;  %v2522_v38 = vadd.f32 %v3176_v14, %v2420_v40 }
 0x260   : > { %v3181_v37 = vpop.f32.mrf.mxu1 }
 0x261   : > { %v3191_v57 = vpop.f32.mrf.mxu0  ;;  %v2619_v51 = vadd.f32 %v3181_v37, %v2517_v60  ;;  %v2520_v11 = vadd.f32 %v2503_v49, %v2418_v23 }
 0x262   : > { %v2586_v29 = vpop.f32.mrf.mxu1 }
 0x263   : > { %v2687_v19 = vpop.f32.mrf.mxu0  ;;  %v2696_v20 = vadd.f32 %v3191_v57, %v2619_v51  ;;  %v2617_v53 = vadd.f32 %v2586_v29, %v2515_v28 }
 0x264   : > { %v3182_v31 = vpop.f32.mrf.mxu1 }
 0x265   : > { %v3192_v59 = vpop.f32.mrf.mxu0  ;;  %2720 = vst.msk [vmem:[%s4185_s18 + $0x10] sm:$0xff] %vm1685_vm4, %v2696_v20  ;;  %v2688_v30 = vadd.f32 %v2687_v19, %v2617_v53  ;;  %v2620_v48 = vadd.f32 %v3182_v31, %v2518_v0 }
 0x266   : > { %v2589_v21 = vpop.f32.mrf.mxu1 }
 0x267   : > { %v2690_v36 = vpop.f32.mrf.mxu0  ;;  %2718 = vst.msk [vmem:[%s4185_s18] sm:$0xff] %vm1685_vm4, %v2688_v30  ;;  %v2699_v62 = vadd.f32 %v3192_v59, %v2620_v48  ;;  %v2618_v45 = vadd.f32 %v2589_v21, %v2516_v15 }
 0x268   : > { %v3185_v61 = vpop.f32.mrf.mxu1 }
 0x269   : > { %v3195_v58 = vpop.f32.mrf.mxu0  ;;  %2721 = vst.msk [vmem:[%s4185_s18 + $0x18] sm:$0xff] %vm1685_vm4, %v2699_v62  ;;  %v2691_v25 = vadd.f32 %v2690_v36, %v2618_v45  ;;  %v2623_v6 = vadd.f32 %v3185_v61, %v2521_v2 }
 0x26a   : > { %v2602_v9 = vpop.f32.mrf.mxu1 }
 0x26b   : > { %v2703_v50 = vpop.f32.mrf.mxu0  ;;  %2719 = vst.msk [vmem:[%s4185_s18 + $0x8] sm:$0xff] %vm1685_vm4, %v2691_v25  ;;  %v2712_v27 = vadd.f32 %v3195_v58, %v2623_v6  ;;  %v2621_v18 = vadd.f32 %v2602_v9, %v2519_v63 }
 0x26c   : > { %v3186_v16 = vpop.f32.mrf.mxu1 }
 0x26d   : > { %v3196_v12 = vpop.f32.mrf.mxu0  ;;  %2724 = vst.msk [vmem:[%s4185_s18 + $0x30] sm:$0xff] %vm1685_vm4, %v2712_v27  ;;  %v2704_v5 = vadd.f32 %v2703_v50, %v2621_v18  ;;  %v2624_v32 = vadd.f32 %v3186_v16, %v2522_v38 }
 0x26e   : > { %v2605_v13 = vpop.f32.mrf.mxu1 }
 0x26f   : > { %2722 = vst.msk [vmem:[%s4185_s18 + $0x20] sm:$0xff] %vm1685_vm4, %v2704_v5  ;;  %v2715_v35 = vadd.f32 %v3196_v12, %v2624_v32  ;;  %v2622_v54 = vadd.f32 %v2605_v13, %v2520_v11  ;;  %v2706_v1 = vpop.f32.mrf.mxu0 }
 0x271   : > { %2725 = vst.msk [vmem:[%s4185_s18 + $0x38] sm:$0xff] %vm1685_vm4, %v2715_v35  ;;  %v2707_v14 = vadd.f32 %v2706_v1, %v2622_v54 }
 0x273   : > { %2723 = vst.msk [vmem:[%s4185_s18 + $0x28] sm:$0xff] %vm1685_vm4, %v2707_v14 }
 0x274   : > { %3274 = shalt.err (!%p3271_p3)
}
 0x275   : > { %s3275_s12 = scalar_lea.hbm %s4205_s23, 1024  ;;  %s3279_s18 = scalar_lea.hbm %s4263_s8, 2048 }
 0x276   : > { %p3276_p4 = scmp.ne.s32.totalorder %s4205_s23, %s3275_s12  ;;  %p3280_p9 = scmp.lt.s32.totalorder %s4205_s23, %s4263_s8 }
 0x277   : > { %p3281_p10 = scmp.lt.s32.totalorder %s3279_s18, %s3275_s12 }
 0x278   : > { %p3277_p7 = pnand %p3276_p4, %p3410_p5 }
 0x279   : > { %p3282_p11 = por %p3281_p10, %p3280_p9 }
 0x27a   : > { %p3278_p8 = pneg %p3277_p7 }
 0x27c   : > { %p3283_p12 = pnand %p3282_p11, %p3278_p8 }
 0x27e   : > { %3286 = shalt.err (!%p3283_p12)
}
 0x27f   : > { %s3325_s22 = smov 128   ;;  %s3326_s24 = smov 8  }
 0x280   : > { %3219 = dma.vmem_to_hbm [thread:$0]  (%p3410_p5), %s4207_s20, 1024, %s4205_s23, %s4215_s9, %s3325_s22, %s3325_s22, %s3326_s24  }
 0x281 PF: > { %p3225_p13 = scmp.ge.s32.totalorder %s3321_s30, 2  ;;  %s2755_s25 = sand.u32 1, %s3309_s27  }
 0x282   : > { %s2756_s26 = scalar_lea.sflag [#allocation7], %s2755_s25 }
 0x283   : > { %p3222_p0 = pnand %p3225_p13, %p3414_p6 }
 0x285   : > { %p3223_p1 = pneg %p3222_p0 }
 0x287   : > { %3304 = dma.done.wait (%p3223_p1), %s2756_s26, 1024  }
 0x288   : > { %3306 = vsyncadd (%p3223_p1), %s2756_s26, 4294966272  ;;  %p18_p2 = scmp.ge.s32.totalorder %s3397_s11, 4   ;;  %s4272_s27 = smov %s3313_s28 }
 0x289   : > { %s4273_s28 = smov %s3317_s29  ;;  %s4274_s29 = smov %s3408_s14 }
 0x28a   : > { %s4275_s30 = smov %s3397_s11  ;;  %20 = sbr.rel (!%p18_p2) target bundleno = 3 (0x3), region = 183 }
 0x28f   :  { %2761 = vsyncpa [#allocation7], 1 }
 0x290   :  { %2763 = vsyncpa [#allocation7 + $0x1], 1 }

</bundles_post_ra>
